<compile_context>
chip_gen: v6e
topology: v6e:2x2x1
jax: 0.10.0
libtpu: 0.0.40
codegen_flags: <defaults>
</compile_context>

<pallas_src>
import functools

import jax
import jax.numpy as jnp
from jax.experimental import pallas as pl
from jax.experimental.pallas import tpu as pltpu


# -----------------------------------------------------------------------------
# Fused Pallas kernel: gru1 -> gru2 -> Linear -> Sigmoid
# -----------------------------------------------------------------------------
def _fused_gru_head_kernel(T, B, H1, H2,
                           x_ref, w1i_ref, b1i_ref, w1h_ref, b1hn_ref,
                           w2i_ref, b2i_ref, w2h_ref, b2hn_ref,
                           wcls_ref, bcls_ref, out_ref):
    """Single-invocation (gridless) kernel.

    x_ref    : (T*B, 2048) bf16   time-major input, flattened over (T, B)
    w1i_ref  : (2048, 3*H1) bf16  gates [r|z|n] on the lane dim
    b1i_ref  : (1, 3*H1) f32      [b_ir+b_hr | b_iz+b_hz | b_in]
    w1h_ref  : (H1, 3*H1) f32     [W_hr | W_hz | W_hn]
    b1hn_ref : (1, H1) f32        b_hn (stays inside r * (h@W_hn + b_hn))
    w2i/b2i/w2h/b2hn : same layout for layer 2 (input dim = H1)
    wcls_ref : (H2, 1) f32, bcls_ref : (1, 1) f32
    out_ref  : (B, 1) f32         sigmoid probabilities
    """
    f32 = jnp.float32

    # ---- layer-1 input projection hoisted out of the recurrence -------------
    # ONE bf16 MXU matmul over all T*B rows, f32 accumulation, folded r/z biases.
    gi1 = jnp.dot(x_ref[...], w1i_ref[...],
                  preferred_element_type=f32) + b1i_ref[...]          # (T*B, 3*H1)

    # ---- hoist recurrent weights / broadcast biases out of the time loop ----
    w1h = w1h_ref[...]
    w2i = w2i_ref[...]
    w2h = w2h_ref[...]
    b1hn = jnp.broadcast_to(b1hn_ref[...], (B, H1))
    b2i = jnp.broadcast_to(b2i_ref[...], (B, 3 * H2))
    b2hn = jnp.broadcast_to(b2hn_ref[...], (B, H2))

    h1 = jnp.zeros((B, H1), f32)
    h2 = jnp.zeros((B, H2), f32)

    # Fully-unrolled static time loop (T is small and static); hidden states
    # stay in vregs across the whole recurrence.
    # TODO(synk): for large T, switch to lax.fori_loop(unroll=k) reading gi1
    #             from a VMEM scratch via pl.ds to bound vreg live ranges and
    #             compile time (perf review: low priority at T=8).
    for t in range(T):
        gi_t = gi1[t * B:(t + 1) * B]                                 # (B, 3*H1)

        # ---- GRU layer 1: one (B,H1)@(H1,3*H1) matmul for all three gates ---
        gh1 = jnp.dot(h1, w1h, preferred_element_type=f32)            # (B, 3*H1)
        rz1 = jax.nn.sigmoid(gi_t[:, :2 * H1] + gh1[:, :2 * H1])      # fused r|z
        z1 = rz1[:, H1:]
        n1 = jnp.tanh(gi_t[:, 2 * H1:] + rz1[:, :H1] * (gh1[:, 2 * H1:] + b1hn))
        h1 = (1.0 - z1) * n1 + z1 * h1
        # nn.Dropout(p=0.3): identity in eval mode

        # ---- GRU layer 2: two (B,·)@(·,3*H2) matmuls; the h2 matmul does not
        # depend on this step's h1 and overlaps layer 1 on the MXU. -----------
        gh2 = jnp.dot(h2, w2h, preferred_element_type=f32)            # (B, 3*H2)
        gi2 = jnp.dot(h1, w2i, preferred_element_type=f32) + b2i      # (B, 3*H2)
        rz2 = jax.nn.sigmoid(gi2[:, :2 * H2] + gh2[:, :2 * H2])       # fused r|z
        z2 = rz2[:, H2:]
        n2 = jnp.tanh(gi2[:, 2 * H2:] + rz2[:, :H2] * (gh2[:, 2 * H2:] + b2hn))
        h2 = (1.0 - z2) * n2 + z2 * h2
        # nn.Dropout(p=0.3): identity in eval mode

    # ---- classifier + sigmoid on the final hidden state of gru2 -------------
    logits = jnp.dot(h2, wcls_ref[...], preferred_element_type=f32) + bcls_ref[...]
    out_ref[...] = jax.nn.sigmoid(logits)


# -----------------------------------------------------------------------------
# One-time host-side repack into lane-dense, MXU-friendly layouts
# -----------------------------------------------------------------------------
def pack_gru_params(params):
    f32, bf16 = jnp.float32, jnp.bfloat16
    wih1, whh1, bih1, bhh1 = (params[k] for k in ("wih1", "whh1", "bih1", "bhh1"))
    wih2, whh2, bih2, bhh2 = (params[k] for k in ("wih2", "whh2", "bih2", "bhh2"))

    return {
        # layer-1 hoisted input projection (bf16 operand, f32 accumulation)
        "w1i": jnp.concatenate([wih1[0], wih1[1], wih1[2]], axis=1).astype(bf16),
        "b1i": jnp.concatenate([bih1[0] + bhh1[0], bih1[1] + bhh1[1], bih1[2]],
                               axis=1).astype(f32),
        # layer-1 recurrent (f32: gate math on the serial path stays f32)
        "w1h": jnp.concatenate([whh1[0], whh1[1], whh1[2]], axis=1).astype(f32),
        "b1hn": bhh1[2].astype(f32),
        # layer-2 input / recurrent
        "w2i": jnp.concatenate([wih2[0], wih2[1], wih2[2]], axis=1).astype(f32),
        "b2i": jnp.concatenate([bih2[0] + bhh2[0], bih2[1] + bhh2[1], bih2[2]],
                               axis=1).astype(f32),
        "w2h": jnp.concatenate([whh2[0], whh2[1], whh2[2]], axis=1).astype(f32),
        "b2hn": bhh2[2].astype(f32),
        # classifier
        "wcls": params["wcls"].astype(f32),
        "bcls": params["bcls"].astype(f32),
    }


def fused_gru_head(features, p):
    """features: (T, B, 2048) f32 time-major -> sigmoid probs (B, 1)."""
    T, B, IN = features.shape
    H1 = p["w1h"].shape[0]
    H2 = p["w2h"].shape[0]
    # bf16 operand for the hoisted projection (halves the x DMA); accumulation
    # inside the kernel remains f32.
    x = features.reshape(T * B, IN).astype(jnp.bfloat16)

    vmem = pl.BlockSpec(memory_space=pltpu.MemorySpace.VMEM)
    kernel = functools.partial(_fused_gru_head_kernel, T, B, H1, H2)

    # TODO(synk): for long sequences / large batches (T*B in the thousands),
    #             tile the hoisted projection with a grid over the T*B axis
    #             marked "parallel" (and set vmem_limit_bytes) so it stays
    #             within v7x's 64 MiB VMEM and can use both v7x TensorCores;
    #             unnecessary at these shapes (<1 MiB resident in VMEM).
    return pl.pallas_call(
        kernel,
        out_shape=jax.ShapeDtypeStruct((B, 1), jnp.float32),
        in_specs=[vmem] * 11,
        out_specs=vmem,
    )(x, p["w1i"], p["b1i"], p["w1h"], p["b1hn"],
      p["w2i"], p["b2i"], p["w2h"], p["b2hn"],
      p["wcls"], p["bcls"])


# -----------------------------------------------------------------------------
# Full forward pass mirroring GRU.forward (eval mode)
# -----------------------------------------------------------------------------
@jax.jit
def gru_forward(frame_features, packed_params):
    """frame_features: (n_frames, B, 2048, T_frame, 1) -- backbone outputs.
    Returns (1, B, 1) sigmoid probabilities (same shape as the PyTorch module)."""
    X = []
    for i in range(frame_features.shape[0]):
        x = jnp.squeeze(frame_features[i], axis=3)     # (B, 2048, T)
        x = jnp.transpose(x, (0, 2, 1))                # (B, T, 2048)
        X.append(x)
    features = jnp.transpose(jnp.concatenate(X, axis=1), (1, 0, 2))  # (seq, B, 2048)

    probs = fused_gru_head(features, packed_params)    # (B, 1)
    return probs[None]                                 # (1, B, 1)


# -----------------------------------------------------------------------------
# Pure-JAX f32 reference (PyTorch semantics) for the correctness check
# -----------------------------------------------------------------------------
def gru_layer_ref(x, wih, whh, bih, bhh):
    H = whh.shape[-1]

    def step(h, xt):
        r = jax.nn.sigmoid(xt @ wih[0] + bih[0] + h @ whh[0] + bhh[0])
        z = jax.nn.sigmoid(xt @ wih[1] + bih[1] + h @ whh[1] + bhh[1])
        n = jnp.tanh(xt @ wih[2] + bih[2] + r * (h @ whh[2] + bhh[2]))
        h_new = (1.0 - z) * n + z * h
        return h_new, h_new

    h0 = jnp.zeros((x.shape[1], H), jnp.float32)
    _, outs = jax.lax.scan(step, h0, x)
    return outs


def forward_ref(frame_features, params):
    X = []
    for i in range(frame_features.shape[0]):
        x = jnp.transpose(jnp.squeeze(frame_features[i], axis=3), (0, 2, 1))
        X.append(x)
    features = jnp.transpose(jnp.concatenate(X, axis=1), (1, 0, 2))
    out1 = gru_layer_ref(features, params["wih1"], params["whh1"],
                         params["bih1"], params["bhh1"])
    out2 = gru_layer_ref(out1, params["wih2"], params["whh2"],
                         params["bih2"], params["bhh2"])
    h_last = out2[-1]
    logits = h_last @ params["wcls"] + params["bcls"]
    return jax.nn.sigmoid(logits)[None]


# -----------------------------------------------------------------------------
# Main
# -----------------------------------------------------------------------------
if __name__ == "__main__":
    key = jax.random.PRNGKey(0)

    n_frames, B, T_frame = 2, 2, 4           # seq = n_frames * T_frame = 8
    FEAT = 2048
    H1, H2 = 32, 32                           # hidden_dim1, hidden_dim2

    keys = jax.random.split(key, 16)

    def uni(k, shape, bound):
        return jax.random.uniform(k, shape, jnp.float32, -bound, bound)

    s1 = 1.0 / jnp.sqrt(H1)
    s2 = 1.0 / jnp.sqrt(H2)
    sc = 1.0 / jnp.sqrt(H2)

    # Per-gate stacked weights, gate order (r, z, n) -- PyTorch convention.
    params = {
        "wih1": uni(keys[0], (3, FEAT, H1), s1),
        "whh1": uni(keys[1], (3, H1, H1), s1),
        "bih1": uni(keys[2], (3, 1, H1), s1),
        "bhh1": uni(keys[3], (3, 1, H1), s1),
        "wih2": uni(keys[4], (3, H1, H2), s2),
        "whh2": uni(keys[5], (3, H2, H2), s2),
        "bih2": uni(keys[6], (3, 1, H2), s2),
        "bhh2": uni(keys[7], (3, 1, H2), s2),
        "wcls": uni(keys[8], (H2, 1), sc),
        "bcls": uni(keys[9], (1, 1), sc),
    }

    frame_features = jax.random.normal(keys[10], (n_frames, B, FEAT, T_frame, 1),
                                       jnp.float32)

    packed = pack_gru_params(params)          # one-time host-side repack

    out = jax.block_until_ready(gru_forward(frame_features, packed))
    ref = jax.block_until_ready(forward_ref(frame_features, params))

    assert out.shape == (1, B, 1), out.shape
    # Tolerance loosened from 1e-3 to 2e-2 because the hoisted K=2048 projection
    # now uses bf16 operands (f32 accumulation), per the perf review.
    assert jnp.allclose(out, ref, rtol=2e-2, atol=2e-2), (out, ref)

    print("KERNEL_OK")
</pallas_src>

<mosaic_0001>
module attributes {stable_mosaic.version = 11 : i64} {
  func.func @_fused_gru_head_kernel(%arg0: memref<16x2048xbf16, #tpu.memory_space<vmem>>, %arg1: memref<2048x96xbf16, #tpu.memory_space<vmem>>, %arg2: memref<1x96xf32, #tpu.memory_space<vmem>>, %arg3: memref<32x96xf32, #tpu.memory_space<vmem>>, %arg4: memref<1x32xf32, #tpu.memory_space<vmem>>, %arg5: memref<32x96xf32, #tpu.memory_space<vmem>>, %arg6: memref<1x96xf32, #tpu.memory_space<vmem>>, %arg7: memref<32x96xf32, #tpu.memory_space<vmem>>, %arg8: memref<1x32xf32, #tpu.memory_space<vmem>>, %arg9: memref<32x1xf32, #tpu.memory_space<vmem>>, %arg10: memref<1x1xf32, #tpu.memory_space<vmem>>, %arg11: memref<2x1xf32, #tpu.memory_space<vmem>>) attributes {dimension_semantics = [], scalar_prefetch = 0 : i64, scratch_operands = 0 : i64, tpu.core_type = #tpu.core_type<tc>} {
    %c0 = arith.constant 0 : index
    %c0_0 = arith.constant 0 : index
    %0 = vector.load %arg0[%c0, %c0_0] : memref<16x2048xbf16, #tpu.memory_space<vmem>>, vector<16x2048xbf16>
    %c0_1 = arith.constant 0 : index
    %c0_2 = arith.constant 0 : index
    %1 = vector.load %arg1[%c0_1, %c0_2] : memref<2048x96xbf16, #tpu.memory_space<vmem>>, vector<2048x96xbf16>
    %cst = arith.constant dense<0.000000e+00> : vector<16x96xf32>
    %2 = tpu.matmul %0, %1, %cst {dimension_numbers = #tpu.dot_dimension_numbers<[1], [0], [0], [1], [0, 0, 1, 1], [], []>} : vector<16x2048xbf16>, vector<2048x96xbf16>, vector<16x96xf32> -> vector<16x96xf32>
    %c0_3 = arith.constant 0 : index
    %c0_4 = arith.constant 0 : index
    %3 = vector.load %arg2[%c0_3, %c0_4] : memref<1x96xf32, #tpu.memory_space<vmem>>, vector<1x96xf32>
    %4 = vector.broadcast %3 : vector<1x96xf32> to vector<16x96xf32>
    %5 = arith.addf %2, %4 : vector<16x96xf32>
    %c0_5 = arith.constant 0 : index
    %c0_6 = arith.constant 0 : index
    %6 = vector.load %arg3[%c0_5, %c0_6] : memref<32x96xf32, #tpu.memory_space<vmem>>, vector<32x96xf32>
    %c0_7 = arith.constant 0 : index
    %c0_8 = arith.constant 0 : index
    %7 = vector.load %arg5[%c0_7, %c0_8] : memref<32x96xf32, #tpu.memory_space<vmem>>, vector<32x96xf32>
    %c0_9 = arith.constant 0 : index
    %c0_10 = arith.constant 0 : index
    %8 = vector.load %arg7[%c0_9, %c0_10] : memref<32x96xf32, #tpu.memory_space<vmem>>, vector<32x96xf32>
    %c0_11 = arith.constant 0 : index
    %c0_12 = arith.constant 0 : index
    %9 = vector.load %arg4[%c0_11, %c0_12] : memref<1x32xf32, #tpu.memory_space<vmem>>, vector<1x32xf32>
    %10 = vector.shape_cast %9 : vector<1x32xf32> to vector<1x32xf32>
    %11 = vector.broadcast %10 : vector<1x32xf32> to vector<2x32xf32>
    %c0_13 = arith.constant 0 : index
    %c0_14 = arith.constant 0 : index
    %12 = vector.load %arg6[%c0_13, %c0_14] : memref<1x96xf32, #tpu.memory_space<vmem>>, vector<1x96xf32>
    %13 = vector.shape_cast %12 : vector<1x96xf32> to vector<1x96xf32>
    %14 = vector.broadcast %13 : vector<1x96xf32> to vector<2x96xf32>
    %c0_15 = arith.constant 0 : index
    %c0_16 = arith.constant 0 : index
    %15 = vector.load %arg8[%c0_15, %c0_16] : memref<1x32xf32, #tpu.memory_space<vmem>>, vector<1x32xf32>
    %16 = vector.shape_cast %15 : vector<1x32xf32> to vector<1x32xf32>
    %17 = vector.broadcast %16 : vector<1x32xf32> to vector<2x32xf32>
    %cst_17 = arith.constant 0.000000e+00 : f32
    %18 = vector.broadcast %cst_17 : f32 to vector<2x32xf32>
    %cst_18 = arith.constant 0.000000e+00 : f32
    %19 = vector.broadcast %cst_18 : f32 to vector<2x32xf32>
    %20 = vector.extract_strided_slice %5 {offsets = [0, 0], sizes = [2, 96], strides = [1, 1]} : vector<16x96xf32> to vector<2x96xf32>
    %cst_19 = arith.constant dense<0.000000e+00> : vector<2x96xf32>
    %21 = tpu.matmul %18, %6, %cst_19 {dimension_numbers = #tpu.dot_dimension_numbers<[1], [0], [0], [1], [0, 0, 1, 1], [], []>} : vector<2x32xf32>, vector<32x96xf32>, vector<2x96xf32> -> vector<2x96xf32>
    %22 = vector.extract_strided_slice %20 {offsets = [0, 0], sizes = [2, 64], strides = [1, 1]} : vector<2x96xf32> to vector<2x64xf32>
    %23 = vector.extract_strided_slice %21 {offsets = [0, 0], sizes = [2, 64], strides = [1, 1]} : vector<2x96xf32> to vector<2x64xf32>
    %24 = arith.addf %22, %23 : vector<2x64xf32>
    %25 = arith.negf %24 : vector<2x64xf32>
    %26 = math.exp %25 : vector<2x64xf32>
    %cst_20 = arith.constant 1.000000e+00 : f32
    %27 = vector.broadcast %cst_20 : f32 to vector<2x64xf32>
    %28 = arith.addf %27, %26 : vector<2x64xf32>
    %29 = arith.divf %27, %28 : vector<2x64xf32>
    %30 = vector.extract_strided_slice %29 {offsets = [0, 32], sizes = [2, 32], strides = [1, 1]} : vector<2x64xf32> to vector<2x32xf32>
    %31 = vector.extract_strided_slice %20 {offsets = [0, 64], sizes = [2, 32], strides = [1, 1]} : vector<2x96xf32> to vector<2x32xf32>
    %32 = vector.extract_strided_slice %29 {offsets = [0, 0], sizes = [2, 32], strides = [1, 1]} : vector<2x64xf32> to vector<2x32xf32>
    %33 = vector.extract_strided_slice %21 {offsets = [0, 64], sizes = [2, 32], strides = [1, 1]} : vector<2x96xf32> to vector<2x32xf32>
    %34 = arith.addf %33, %11 : vector<2x32xf32>
    %35 = arith.mulf %32, %34 : vector<2x32xf32>
    %36 = arith.addf %31, %35 : vector<2x32xf32>
    %37 = math.tanh %36 : vector<2x32xf32>
    %cst_21 = arith.constant 1.000000e+00 : f32
    %38 = vector.broadcast %cst_21 : f32 to vector<2x32xf32>
    %39 = arith.subf %38, %30 : vector<2x32xf32>
    %40 = arith.mulf %39, %37 : vector<2x32xf32>
    %41 = arith.mulf %30, %18 : vector<2x32xf32>
    %42 = arith.addf %40, %41 : vector<2x32xf32>
    %cst_22 = arith.constant dense<0.000000e+00> : vector<2x96xf32>
    %43 = tpu.matmul %19, %8, %cst_22 {dimension_numbers = #tpu.dot_dimension_numbers<[1], [0], [0], [1], [0, 0, 1, 1], [], []>} : vector<2x32xf32>, vector<32x96xf32>, vector<2x96xf32> -> vector<2x96xf32>
    %cst_23 = arith.constant dense<0.000000e+00> : vector<2x96xf32>
    %44 = tpu.matmul %42, %7, %cst_23 {dimension_numbers = #tpu.dot_dimension_numbers<[1], [0], [0], [1], [0, 0, 1, 1], [], []>} : vector<2x32xf32>, vector<32x96xf32>, vector<2x96xf32> -> vector<2x96xf32>
    %45 = arith.addf %44, %14 : vector<2x96xf32>
    %46 = vector.extract_strided_slice %45 {offsets = [0, 0], sizes = [2, 64], strides = [1, 1]} : vector<2x96xf32> to vector<2x64xf32>
    %47 = vector.extract_strided_slice %43 {offsets = [0, 0], sizes = [2, 64], strides = [1, 1]} : vector<2x96xf32> to vector<2x64xf32>
    %48 = arith.addf %46, %47 : vector<2x64xf32>
    %49 = arith.negf %48 : vector<2x64xf32>
    %50 = math.exp %49 : vector<2x64xf32>
    %cst_24 = arith.constant 1.000000e+00 : f32
    %51 = vector.broadcast %cst_24 : f32 to vector<2x64xf32>
    %52 = arith.addf %51, %50 : vector<2x64xf32>
    %53 = arith.divf %51, %52 : vector<2x64xf32>
    %54 = vector.extract_strided_slice %53 {offsets = [0, 32], sizes = [2, 32], strides = [1, 1]} : vector<2x64xf32> to vector<2x32xf32>
    %55 = vector.extract_strided_slice %45 {offsets = [0, 64], sizes = [2, 32], strides = [1, 1]} : vector<2x96xf32> to vector<2x32xf32>
    %56 = vector.extract_strided_slice %53 {offsets = [0, 0], sizes = [2, 32], strides = [1, 1]} : vector<2x64xf32> to vector<2x32xf32>
    %57 = vector.extract_strided_slice %43 {offsets = [0, 64], sizes = [2, 32], strides = [1, 1]} : vector<2x96xf32> to vector<2x32xf32>
    %58 = arith.addf %57, %17 : vector<2x32xf32>
    %59 = arith.mulf %56, %58 : vector<2x32xf32>
    %60 = arith.addf %55, %59 : vector<2x32xf32>
    %61 = math.tanh %60 : vector<2x32xf32>
    %cst_25 = arith.constant 1.000000e+00 : f32
    %62 = vector.broadcast %cst_25 : f32 to vector<2x32xf32>
    %63 = arith.subf %62, %54 : vector<2x32xf32>
    %64 = arith.mulf %63, %61 : vector<2x32xf32>
    %65 = arith.mulf %54, %19 : vector<2x32xf32>
    %66 = arith.addf %64, %65 : vector<2x32xf32>
    %67 = vector.extract_strided_slice %5 {offsets = [2, 0], sizes = [2, 96], strides = [1, 1]} : vector<16x96xf32> to vector<2x96xf32>
    %cst_26 = arith.constant dense<0.000000e+00> : vector<2x96xf32>
    %68 = tpu.matmul %42, %6, %cst_26 {dimension_numbers = #tpu.dot_dimension_numbers<[1], [0], [0], [1], [0, 0, 1, 1], [], []>} : vector<2x32xf32>, vector<32x96xf32>, vector<2x96xf32> -> vector<2x96xf32>
    %69 = vector.extract_strided_slice %67 {offsets = [0, 0], sizes = [2, 64], strides = [1, 1]} : vector<2x96xf32> to vector<2x64xf32>
    %70 = vector.extract_strided_slice %68 {offsets = [0, 0], sizes = [2, 64], strides = [1, 1]} : vector<2x96xf32> to vector<2x64xf32>
    %71 = arith.addf %69, %70 : vector<2x64xf32>
    %72 = arith.negf %71 : vector<2x64xf32>
    %73 = math.exp %72 : vector<2x64xf32>
    %cst_27 = arith.constant 1.000000e+00 : f32
    %74 = vector.broadcast %cst_27 : f32 to vector<2x64xf32>
    %75 = arith.addf %74, %73 : vector<2x64xf32>
    %76 = arith.divf %74, %75 : vector<2x64xf32>
    %77 = vector.extract_strided_slice %76 {offsets = [0, 32], sizes = [2, 32], strides = [1, 1]} : vector<2x64xf32> to vector<2x32xf32>
    %78 = vector.extract_strided_slice %67 {offsets = [0, 64], sizes = [2, 32], strides = [1, 1]} : vector<2x96xf32> to vector<2x32xf32>
    %79 = vector.extract_strided_slice %76 {offsets = [0, 0], sizes = [2, 32], strides = [1, 1]} : vector<2x64xf32> to vector<2x32xf32>
    %80 = vector.extract_strided_slice %68 {offsets = [0, 64], sizes = [2, 32], strides = [1, 1]} : vector<2x96xf32> to vector<2x32xf32>
    %81 = arith.addf %80, %11 : vector<2x32xf32>
    %82 = arith.mulf %79, %81 : vector<2x32xf32>
    %83 = arith.addf %78, %82 : vector<2x32xf32>
    %84 = math.tanh %83 : vector<2x32xf32>
    %cst_28 = arith.constant 1.000000e+00 : f32
    %85 = vector.broadcast %cst_28 : f32 to vector<2x32xf32>
    %86 = arith.subf %85, %77 : vector<2x32xf32>
    %87 = arith.mulf %86, %84 : vector<2x32xf32>
    %88 = arith.mulf %77, %42 : vector<2x32xf32>
    %89 = arith.addf %87, %88 : vector<2x32xf32>
    %cst_29 = arith.constant dense<0.000000e+00> : vector<2x96xf32>
    %90 = tpu.matmul %66, %8, %cst_29 {dimension_numbers = #tpu.dot_dimension_numbers<[1], [0], [0], [1], [0, 0, 1, 1], [], []>} : vector<2x32xf32>, vector<32x96xf32>, vector<2x96xf32> -> vector<2x96xf32>
    %cst_30 = arith.constant dense<0.000000e+00> : vector<2x96xf32>
    %91 = tpu.matmul %89, %7, %cst_30 {dimension_numbers = #tpu.dot_dimension_numbers<[1], [0], [0], [1], [0, 0, 1, 1], [], []>} : vector<2x32xf32>, vector<32x96xf32>, vector<2x96xf32> -> vector<2x96xf32>
    %92 = arith.addf %91, %14 : vector<2x96xf32>
    %93 = vector.extract_strided_slice %92 {offsets = [0, 0], sizes = [2, 64], strides = [1, 1]} : vector<2x96xf32> to vector<2x64xf32>
    %94 = vector.extract_strided_slice %90 {offsets = [0, 0], sizes = [2, 64], strides = [1, 1]} : vector<2x96xf32> to vector<2x64xf32>
    %95 = arith.addf %93, %94 : vector<2x64xf32>
    %96 = arith.negf %95 : vector<2x64xf32>
    %97 = math.exp %96 : vector<2x64xf32>
    %cst_31 = arith.constant 1.000000e+00 : f32
    %98 = vector.broadcast %cst_31 : f32 to vector<2x64xf32>
    %99 = arith.addf %98, %97 : vector<2x64xf32>
    %100 = arith.divf %98, %99 : vector<2x64xf32>
    %101 = vector.extract_strided_slice %100 {offsets = [0, 32], sizes = [2, 32], strides = [1, 1]} : vector<2x64xf32> to vector<2x32xf32>
    %102 = vector.extract_strided_slice %92 {offsets = [0, 64], sizes = [2, 32], strides = [1, 1]} : vector<2x96xf32> to vector<2x32xf32>
    %103 = vector.extract_strided_slice %100 {offsets = [0, 0], sizes = [2, 32], strides = [1, 1]} : vector<2x64xf32> to vector<2x32xf32>
    %104 = vector.extract_strided_slice %90 {offsets = [0, 64], sizes = [2, 32], strides = [1, 1]} : vector<2x96xf32> to vector<2x32xf32>
    %105 = arith.addf %104, %17 : vector<2x32xf32>
    %106 = arith.mulf %103, %105 : vector<2x32xf32>
    %107 = arith.addf %102, %106 : vector<2x32xf32>
    %108 = math.tanh %107 : vector<2x32xf32>
    %cst_32 = arith.constant 1.000000e+00 : f32
    %109 = vector.broadcast %cst_32 : f32 to vector<2x32xf32>
    %110 = arith.subf %109, %101 : vector<2x32xf32>
    %111 = arith.mulf %110, %108 : vector<2x32xf32>
    %112 = arith.mulf %101, %66 : vector<2x32xf32>
    %113 = arith.addf %111, %112 : vector<2x32xf32>
    %114 = vector.extract_strided_slice %5 {offsets = [4, 0], sizes = [2, 96], strides = [1, 1]} : vector<16x96xf32> to vector<2x96xf32>
    %cst_33 = arith.constant dense<0.000000e+00> : vector<2x96xf32>
    %115 = tpu.matmul %89, %6, %cst_33 {dimension_numbers = #tpu.dot_dimension_numbers<[1], [0], [0], [1], [0, 0, 1, 1], [], []>} : vector<2x32xf32>, vector<32x96xf32>, vector<2x96xf32> -> vector<2x96xf32>
    %116 = vector.extract_strided_slice %114 {offsets = [0, 0], sizes = [2, 64], strides = [1, 1]} : vector<2x96xf32> to vector<2x64xf32>
    %117 = vector.extract_strided_slice %115 {offsets = [0, 0], sizes = [2, 64], strides = [1, 1]} : vector<2x96xf32> to vector<2x64xf32>
    %118 = arith.addf %116, %117 : vector<2x64xf32>
    %119 = arith.negf %118 : vector<2x64xf32>
    %120 = math.exp %119 : vector<2x64xf32>
    %cst_34 = arith.constant 1.000000e+00 : f32
    %121 = vector.broadcast %cst_34 : f32 to vector<2x64xf32>
    %122 = arith.addf %121, %120 : vector<2x64xf32>
    %123 = arith.divf %121, %122 : vector<2x64xf32>
    %124 = vector.extract_strided_slice %123 {offsets = [0, 32], sizes = [2, 32], strides = [1, 1]} : vector<2x64xf32> to vector<2x32xf32>
    %125 = vector.extract_strided_slice %114 {offsets = [0, 64], sizes = [2, 32], strides = [1, 1]} : vector<2x96xf32> to vector<2x32xf32>
    %126 = vector.extract_strided_slice %123 {offsets = [0, 0], sizes = [2, 32], strides = [1, 1]} : vector<2x64xf32> to vector<2x32xf32>
    %127 = vector.extract_strided_slice %115 {offsets = [0, 64], sizes = [2, 32], strides = [1, 1]} : vector<2x96xf32> to vector<2x32xf32>
    %128 = arith.addf %127, %11 : vector<2x32xf32>
    %129 = arith.mulf %126, %128 : vector<2x32xf32>
    %130 = arith.addf %125, %129 : vector<2x32xf32>
    %131 = math.tanh %130 : vector<2x32xf32>
    %cst_35 = arith.constant 1.000000e+00 : f32
    %132 = vector.broadcast %cst_35 : f32 to vector<2x32xf32>
    %133 = arith.subf %132, %124 : vector<2x32xf32>
    %134 = arith.mulf %133, %131 : vector<2x32xf32>
    %135 = arith.mulf %124, %89 : vector<2x32xf32>
    %136 = arith.addf %134, %135 : vector<2x32xf32>
    %cst_36 = arith.constant dense<0.000000e+00> : vector<2x96xf32>
    %137 = tpu.matmul %113, %8, %cst_36 {dimension_numbers = #tpu.dot_dimension_numbers<[1], [0], [0], [1], [0, 0, 1, 1], [], []>} : vector<2x32xf32>, vector<32x96xf32>, vector<2x96xf32> -> vector<2x96xf32>
    %cst_37 = arith.constant dense<0.000000e+00> : vector<2x96xf32>
    %138 = tpu.matmul %136, %7, %cst_37 {dimension_numbers = #tpu.dot_dimension_numbers<[1], [0], [0], [1], [0, 0, 1, 1], [], []>} : vector<2x32xf32>, vector<32x96xf32>, vector<2x96xf32> -> vector<2x96xf32>
    %139 = arith.addf %138, %14 : vector<2x96xf32>
    %140 = vector.extract_strided_slice %139 {offsets = [0, 0], sizes = [2, 64], strides = [1, 1]} : vector<2x96xf32> to vector<2x64xf32>
    %141 = vector.extract_strided_slice %137 {offsets = [0, 0], sizes = [2, 64], strides = [1, 1]} : vector<2x96xf32> to vector<2x64xf32>
    %142 = arith.addf %140, %141 : vector<2x64xf32>
    %143 = arith.negf %142 : vector<2x64xf32>
    %144 = math.exp %143 : vector<2x64xf32>
    %cst_38 = arith.constant 1.000000e+00 : f32
    %145 = vector.broadcast %cst_38 : f32 to vector<2x64xf32>
    %146 = arith.addf %145, %144 : vector<2x64xf32>
    %147 = arith.divf %145, %146 : vector<2x64xf32>
    %148 = vector.extract_strided_slice %147 {offsets = [0, 32], sizes = [2, 32], strides = [1, 1]} : vector<2x64xf32> to vector<2x32xf32>
    %149 = vector.extract_strided_slice %139 {offsets = [0, 64], sizes = [2, 32], strides = [1, 1]} : vector<2x96xf32> to vector<2x32xf32>
    %150 = vector.extract_strided_slice %147 {offsets = [0, 0], sizes = [2, 32], strides = [1, 1]} : vector<2x64xf32> to vector<2x32xf32>
    %151 = vector.extract_strided_slice %137 {offsets = [0, 64], sizes = [2, 32], strides = [1, 1]} : vector<2x96xf32> to vector<2x32xf32>
    %152 = arith.addf %151, %17 : vector<2x32xf32>
    %153 = arith.mulf %150, %152 : vector<2x32xf32>
    %154 = arith.addf %149, %153 : vector<2x32xf32>
    %155 = math.tanh %154 : vector<2x32xf32>
    %cst_39 = arith.constant 1.000000e+00 : f32
    %156 = vector.broadcast %cst_39 : f32 to vector<2x32xf32>
    %157 = arith.subf %156, %148 : vector<2x32xf32>
    %158 = arith.mulf %157, %155 : vector<2x32xf32>
    %159 = arith.mulf %148, %113 : vector<2x32xf32>
    %160 = arith.addf %158, %159 : vector<2x32xf32>
    %161 = vector.extract_strided_slice %5 {offsets = [6, 0], sizes = [2, 96], strides = [1, 1]} : vector<16x96xf32> to vector<2x96xf32>
    %cst_40 = arith.constant dense<0.000000e+00> : vector<2x96xf32>
    %162 = tpu.matmul %136, %6, %cst_40 {dimension_numbers = #tpu.dot_dimension_numbers<[1], [0], [0], [1], [0, 0, 1, 1], [], []>} : vector<2x32xf32>, vector<32x96xf32>, vector<2x96xf32> -> vector<2x96xf32>
    %163 = vector.extract_strided_slice %161 {offsets = [0, 0], sizes = [2, 64], strides = [1, 1]} : vector<2x96xf32> to vector<2x64xf32>
    %164 = vector.extract_strided_slice %162 {offsets = [0, 0], sizes = [2, 64], strides = [1, 1]} : vector<2x96xf32> to vector<2x64xf32>
    %165 = arith.addf %163, %164 : vector<2x64xf32>
    %166 = arith.negf %165 : vector<2x64xf32>
    %167 = math.exp %166 : vector<2x64xf32>
    %cst_41 = arith.constant 1.000000e+00 : f32
    %168 = vector.broadcast %cst_41 : f32 to vector<2x64xf32>
    %169 = arith.addf %168, %167 : vector<2x64xf32>
    %170 = arith.divf %168, %169 : vector<2x64xf32>
    %171 = vector.extract_strided_slice %170 {offsets = [0, 32], sizes = [2, 32], strides = [1, 1]} : vector<2x64xf32> to vector<2x32xf32>
    %172 = vector.extract_strided_slice %161 {offsets = [0, 64], sizes = [2, 32], strides = [1, 1]} : vector<2x96xf32> to vector<2x32xf32>
    %173 = vector.extract_strided_slice %170 {offsets = [0, 0], sizes = [2, 32], strides = [1, 1]} : vector<2x64xf32> to vector<2x32xf32>
    %174 = vector.extract_strided_slice %162 {offsets = [0, 64], sizes = [2, 32], strides = [1, 1]} : vector<2x96xf32> to vector<2x32xf32>
    %175 = arith.addf %174, %11 : vector<2x32xf32>
    %176 = arith.mulf %173, %175 : vector<2x32xf32>
    %177 = arith.addf %172, %176 : vector<2x32xf32>
    %178 = math.tanh %177 : vector<2x32xf32>
    %cst_42 = arith.constant 1.000000e+00 : f32
    %179 = vector.broadcast %cst_42 : f32 to vector<2x32xf32>
    %180 = arith.subf %179, %171 : vector<2x32xf32>
    %181 = arith.mulf %180, %178 : vector<2x32xf32>
    %182 = arith.mulf %171, %136 : vector<2x32xf32>
    %183 = arith.addf %181, %182 : vector<2x32xf32>
    %cst_43 = arith.constant dense<0.000000e+00> : vector<2x96xf32>
    %184 = tpu.matmul %160, %8, %cst_43 {dimension_numbers = #tpu.dot_dimension_numbers<[1], [0], [0], [1], [0, 0, 1, 1], [], []>} : vector<2x32xf32>, vector<32x96xf32>, vector<2x96xf32> -> vector<2x96xf32>
    %cst_44 = arith.constant dense<0.000000e+00> : vector<2x96xf32>
    %185 = tpu.matmul %183, %7, %cst_44 {dimension_numbers = #tpu.dot_dimension_numbers<[1], [0], [0], [1], [0, 0, 1, 1], [], []>} : vector<2x32xf32>, vector<32x96xf32>, vector<2x96xf32> -> vector<2x96xf32>
    %186 = arith.addf %185, %14 : vector<2x96xf32>
    %187 = vector.extract_strided_slice %186 {offsets = [0, 0], sizes = [2, 64], strides = [1, 1]} : vector<2x96xf32> to vector<2x64xf32>
    %188 = vector.extract_strided_slice %184 {offsets = [0, 0], sizes = [2, 64], strides = [1, 1]} : vector<2x96xf32> to vector<2x64xf32>
    %189 = arith.addf %187, %188 : vector<2x64xf32>
    %190 = arith.negf %189 : vector<2x64xf32>
    %191 = math.exp %190 : vector<2x64xf32>
    %cst_45 = arith.constant 1.000000e+00 : f32
    %192 = vector.broadcast %cst_45 : f32 to vector<2x64xf32>
    %193 = arith.addf %192, %191 : vector<2x64xf32>
    %194 = arith.divf %192, %193 : vector<2x64xf32>
    %195 = vector.extract_strided_slice %194 {offsets = [0, 32], sizes = [2, 32], strides = [1, 1]} : vector<2x64xf32> to vector<2x32xf32>
    %196 = vector.extract_strided_slice %186 {offsets = [0, 64], sizes = [2, 32], strides = [1, 1]} : vector<2x96xf32> to vector<2x32xf32>
    %197 = vector.extract_strided_slice %194 {offsets = [0, 0], sizes = [2, 32], strides = [1, 1]} : vector<2x64xf32> to vector<2x32xf32>
    %198 = vector.extract_strided_slice %184 {offsets = [0, 64], sizes = [2, 32], strides = [1, 1]} : vector<2x96xf32> to vector<2x32xf32>
    %199 = arith.addf %198, %17 : vector<2x32xf32>
    %200 = arith.mulf %197, %199 : vector<2x32xf32>
    %201 = arith.addf %196, %200 : vector<2x32xf32>
    %202 = math.tanh %201 : vector<2x32xf32>
    %cst_46 = arith.constant 1.000000e+00 : f32
    %203 = vector.broadcast %cst_46 : f32 to vector<2x32xf32>
    %204 = arith.subf %203, %195 : vector<2x32xf32>
    %205 = arith.mulf %204, %202 : vector<2x32xf32>
    %206 = arith.mulf %195, %160 : vector<2x32xf32>
    %207 = arith.addf %205, %206 : vector<2x32xf32>
    %208 = vector.extract_strided_slice %5 {offsets = [8, 0], sizes = [2, 96], strides = [1, 1]} : vector<16x96xf32> to vector<2x96xf32>
    %cst_47 = arith.constant dense<0.000000e+00> : vector<2x96xf32>
    %209 = tpu.matmul %183, %6, %cst_47 {dimension_numbers = #tpu.dot_dimension_numbers<[1], [0], [0], [1], [0, 0, 1, 1], [], []>} : vector<2x32xf32>, vector<32x96xf32>, vector<2x96xf32> -> vector<2x96xf32>
    %210 = vector.extract_strided_slice %208 {offsets = [0, 0], sizes = [2, 64], strides = [1, 1]} : vector<2x96xf32> to vector<2x64xf32>
    %211 = vector.extract_strided_slice %209 {offsets = [0, 0], sizes = [2, 64], strides = [1, 1]} : vector<2x96xf32> to vector<2x64xf32>
    %212 = arith.addf %210, %211 : vector<2x64xf32>
    %213 = arith.negf %212 : vector<2x64xf32>
    %214 = math.exp %213 : vector<2x64xf32>
    %cst_48 = arith.constant 1.000000e+00 : f32
    %215 = vector.broadcast %cst_48 : f32 to vector<2x64xf32>
    %216 = arith.addf %215, %214 : vector<2x64xf32>
    %217 = arith.divf %215, %216 : vector<2x64xf32>
    %218 = vector.extract_strided_slice %217 {offsets = [0, 32], sizes = [2, 32], strides = [1, 1]} : vector<2x64xf32> to vector<2x32xf32>
    %219 = vector.extract_strided_slice %208 {offsets = [0, 64], sizes = [2, 32], strides = [1, 1]} : vector<2x96xf32> to vector<2x32xf32>
    %220 = vector.extract_strided_slice %217 {offsets = [0, 0], sizes = [2, 32], strides = [1, 1]} : vector<2x64xf32> to vector<2x32xf32>
    %221 = vector.extract_strided_slice %209 {offsets = [0, 64], sizes = [2, 32], strides = [1, 1]} : vector<2x96xf32> to vector<2x32xf32>
    %222 = arith.addf %221, %11 : vector<2x32xf32>
    %223 = arith.mulf %220, %222 : vector<2x32xf32>
    %224 = arith.addf %219, %223 : vector<2x32xf32>
    %225 = math.tanh %224 : vector<2x32xf32>
    %cst_49 = arith.constant 1.000000e+00 : f32
    %226 = vector.broadcast %cst_49 : f32 to vector<2x32xf32>
    %227 = arith.subf %226, %218 : vector<2x32xf32>
    %228 = arith.mulf %227, %225 : vector<2x32xf32>
    %229 = arith.mulf %218, %183 : vector<2x32xf32>
    %230 = arith.addf %228, %229 : vector<2x32xf32>
    %cst_50 = arith.constant dense<0.000000e+00> : vector<2x96xf32>
    %231 = tpu.matmul %207, %8, %cst_50 {dimension_numbers = #tpu.dot_dimension_numbers<[1], [0], [0], [1], [0, 0, 1, 1], [], []>} : vector<2x32xf32>, vector<32x96xf32>, vector<2x96xf32> -> vector<2x96xf32>
    %cst_51 = arith.constant dense<0.000000e+00> : vector<2x96xf32>
    %232 = tpu.matmul %230, %7, %cst_51 {dimension_numbers = #tpu.dot_dimension_numbers<[1], [0], [0], [1], [0, 0, 1, 1], [], []>} : vector<2x32xf32>, vector<32x96xf32>, vector<2x96xf32> -> vector<2x96xf32>
    %233 = arith.addf %232, %14 : vector<2x96xf32>
    %234 = vector.extract_strided_slice %233 {offsets = [0, 0], sizes = [2, 64], strides = [1, 1]} : vector<2x96xf32> to vector<2x64xf32>
    %235 = vector.extract_strided_slice %231 {offsets = [0, 0], sizes = [2, 64], strides = [1, 1]} : vector<2x96xf32> to vector<2x64xf32>
    %236 = arith.addf %234, %235 : vector<2x64xf32>
    %237 = arith.negf %236 : vector<2x64xf32>
    %238 = math.exp %237 : vector<2x64xf32>
    %cst_52 = arith.constant 1.000000e+00 : f32
    %239 = vector.broadcast %cst_52 : f32 to vector<2x64xf32>
    %240 = arith.addf %239, %238 : vector<2x64xf32>
    %241 = arith.divf %239, %240 : vector<2x64xf32>
    %242 = vector.extract_strided_slice %241 {offsets = [0, 32], sizes = [2, 32], strides = [1, 1]} : vector<2x64xf32> to vector<2x32xf32>
    %243 = vector.extract_strided_slice %233 {offsets = [0, 64], sizes = [2, 32], strides = [1, 1]} : vector<2x96xf32> to vector<2x32xf32>
    %244 = vector.extract_strided_slice %241 {offsets = [0, 0], sizes = [2, 32], strides = [1, 1]} : vector<2x64xf32> to vector<2x32xf32>
    %245 = vector.extract_strided_slice %231 {offsets = [0, 64], sizes = [2, 32], strides = [1, 1]} : vector<2x96xf32> to vector<2x32xf32>
    %246 = arith.addf %245, %17 : vector<2x32xf32>
    %247 = arith.mulf %244, %246 : vector<2x32xf32>
    %248 = arith.addf %243, %247 : vector<2x32xf32>
    %249 = math.tanh %248 : vector<2x32xf32>
    %cst_53 = arith.constant 1.000000e+00 : f32
    %250 = vector.broadcast %cst_53 : f32 to vector<2x32xf32>
    %251 = arith.subf %250, %242 : vector<2x32xf32>
    %252 = arith.mulf %251, %249 : vector<2x32xf32>
    %253 = arith.mulf %242, %207 : vector<2x32xf32>
    %254 = arith.addf %252, %253 : vector<2x32xf32>
    %255 = vector.extract_strided_slice %5 {offsets = [10, 0], sizes = [2, 96], strides = [1, 1]} : vector<16x96xf32> to vector<2x96xf32>
    %cst_54 = arith.constant dense<0.000000e+00> : vector<2x96xf32>
    %256 = tpu.matmul %230, %6, %cst_54 {dimension_numbers = #tpu.dot_dimension_numbers<[1], [0], [0], [1], [0, 0, 1, 1], [], []>} : vector<2x32xf32>, vector<32x96xf32>, vector<2x96xf32> -> vector<2x96xf32>
    %257 = vector.extract_strided_slice %255 {offsets = [0, 0], sizes = [2, 64], strides = [1, 1]} : vector<2x96xf32> to vector<2x64xf32>
    %258 = vector.extract_strided_slice %256 {offsets = [0, 0], sizes = [2, 64], strides = [1, 1]} : vector<2x96xf32> to vector<2x64xf32>
    %259 = arith.addf %257, %258 : vector<2x64xf32>
    %260 = arith.negf %259 : vector<2x64xf32>
    %261 = math.exp %260 : vector<2x64xf32>
    %cst_55 = arith.constant 1.000000e+00 : f32
    %262 = vector.broadcast %cst_55 : f32 to vector<2x64xf32>
    %263 = arith.addf %262, %261 : vector<2x64xf32>
    %264 = arith.divf %262, %263 : vector<2x64xf32>
    %265 = vector.extract_strided_slice %264 {offsets = [0, 32], sizes = [2, 32], strides = [1, 1]} : vector<2x64xf32> to vector<2x32xf32>
    %266 = vector.extract_strided_slice %255 {offsets = [0, 64], sizes = [2, 32], strides = [1, 1]} : vector<2x96xf32> to vector<2x32xf32>
    %267 = vector.extract_strided_slice %264 {offsets = [0, 0], sizes = [2, 32], strides = [1, 1]} : vector<2x64xf32> to vector<2x32xf32>
    %268 = vector.extract_strided_slice %256 {offsets = [0, 64], sizes = [2, 32], strides = [1, 1]} : vector<2x96xf32> to vector<2x32xf32>
    %269 = arith.addf %268, %11 : vector<2x32xf32>
    %270 = arith.mulf %267, %269 : vector<2x32xf32>
    %271 = arith.addf %266, %270 : vector<2x32xf32>
    %272 = math.tanh %271 : vector<2x32xf32>
    %cst_56 = arith.constant 1.000000e+00 : f32
    %273 = vector.broadcast %cst_56 : f32 to vector<2x32xf32>
    %274 = arith.subf %273, %265 : vector<2x32xf32>
    %275 = arith.mulf %274, %272 : vector<2x32xf32>
    %276 = arith.mulf %265, %230 : vector<2x32xf32>
    %277 = arith.addf %275, %276 : vector<2x32xf32>
    %cst_57 = arith.constant dense<0.000000e+00> : vector<2x96xf32>
    %278 = tpu.matmul %254, %8, %cst_57 {dimension_numbers = #tpu.dot_dimension_numbers<[1], [0], [0], [1], [0, 0, 1, 1], [], []>} : vector<2x32xf32>, vector<32x96xf32>, vector<2x96xf32> -> vector<2x96xf32>
    %cst_58 = arith.constant dense<0.000000e+00> : vector<2x96xf32>
    %279 = tpu.matmul %277, %7, %cst_58 {dimension_numbers = #tpu.dot_dimension_numbers<[1], [0], [0], [1], [0, 0, 1, 1], [], []>} : vector<2x32xf32>, vector<32x96xf32>, vector<2x96xf32> -> vector<2x96xf32>
    %280 = arith.addf %279, %14 : vector<2x96xf32>
    %281 = vector.extract_strided_slice %280 {offsets = [0, 0], sizes = [2, 64], strides = [1, 1]} : vector<2x96xf32> to vector<2x64xf32>
    %282 = vector.extract_strided_slice %278 {offsets = [0, 0], sizes = [2, 64], strides = [1, 1]} : vector<2x96xf32> to vector<2x64xf32>
    %283 = arith.addf %281, %282 : vector<2x64xf32>
    %284 = arith.negf %283 : vector<2x64xf32>
    %285 = math.exp %284 : vector<2x64xf32>
    %cst_59 = arith.constant 1.000000e+00 : f32
    %286 = vector.broadcast %cst_59 : f32 to vector<2x64xf32>
    %287 = arith.addf %286, %285 : vector<2x64xf32>
    %288 = arith.divf %286, %287 : vector<2x64xf32>
    %289 = vector.extract_strided_slice %288 {offsets = [0, 32], sizes = [2, 32], strides = [1, 1]} : vector<2x64xf32> to vector<2x32xf32>
    %290 = vector.extract_strided_slice %280 {offsets = [0, 64], sizes = [2, 32], strides = [1, 1]} : vector<2x96xf32> to vector<2x32xf32>
    %291 = vector.extract_strided_slice %288 {offsets = [0, 0], sizes = [2, 32], strides = [1, 1]} : vector<2x64xf32> to vector<2x32xf32>
    %292 = vector.extract_strided_slice %278 {offsets = [0, 64], sizes = [2, 32], strides = [1, 1]} : vector<2x96xf32> to vector<2x32xf32>
    %293 = arith.addf %292, %17 : vector<2x32xf32>
    %294 = arith.mulf %291, %293 : vector<2x32xf32>
    %295 = arith.addf %290, %294 : vector<2x32xf32>
    %296 = math.tanh %295 : vector<2x32xf32>
    %cst_60 = arith.constant 1.000000e+00 : f32
    %297 = vector.broadcast %cst_60 : f32 to vector<2x32xf32>
    %298 = arith.subf %297, %289 : vector<2x32xf32>
    %299 = arith.mulf %298, %296 : vector<2x32xf32>
    %300 = arith.mulf %289, %254 : vector<2x32xf32>
    %301 = arith.addf %299, %300 : vector<2x32xf32>
    %302 = vector.extract_strided_slice %5 {offsets = [12, 0], sizes = [2, 96], strides = [1, 1]} : vector<16x96xf32> to vector<2x96xf32>
    %cst_61 = arith.constant dense<0.000000e+00> : vector<2x96xf32>
    %303 = tpu.matmul %277, %6, %cst_61 {dimension_numbers = #tpu.dot_dimension_numbers<[1], [0], [0], [1], [0, 0, 1, 1], [], []>} : vector<2x32xf32>, vector<32x96xf32>, vector<2x96xf32> -> vector<2x96xf32>
    %304 = vector.extract_strided_slice %302 {offsets = [0, 0], sizes = [2, 64], strides = [1, 1]} : vector<2x96xf32> to vector<2x64xf32>
    %305 = vector.extract_strided_slice %303 {offsets = [0, 0], sizes = [2, 64], strides = [1, 1]} : vector<2x96xf32> to vector<2x64xf32>
    %306 = arith.addf %304, %305 : vector<2x64xf32>
    %307 = arith.negf %306 : vector<2x64xf32>
    %308 = math.exp %307 : vector<2x64xf32>
    %cst_62 = arith.constant 1.000000e+00 : f32
    %309 = vector.broadcast %cst_62 : f32 to vector<2x64xf32>
    %310 = arith.addf %309, %308 : vector<2x64xf32>
    %311 = arith.divf %309, %310 : vector<2x64xf32>
    %312 = vector.extract_strided_slice %311 {offsets = [0, 32], sizes = [2, 32], strides = [1, 1]} : vector<2x64xf32> to vector<2x32xf32>
    %313 = vector.extract_strided_slice %302 {offsets = [0, 64], sizes = [2, 32], strides = [1, 1]} : vector<2x96xf32> to vector<2x32xf32>
    %314 = vector.extract_strided_slice %311 {offsets = [0, 0], sizes = [2, 32], strides = [1, 1]} : vector<2x64xf32> to vector<2x32xf32>
    %315 = vector.extract_strided_slice %303 {offsets = [0, 64], sizes = [2, 32], strides = [1, 1]} : vector<2x96xf32> to vector<2x32xf32>
    %316 = arith.addf %315, %11 : vector<2x32xf32>
    %317 = arith.mulf %314, %316 : vector<2x32xf32>
    %318 = arith.addf %313, %317 : vector<2x32xf32>
    %319 = math.tanh %318 : vector<2x32xf32>
    %cst_63 = arith.constant 1.000000e+00 : f32
    %320 = vector.broadcast %cst_63 : f32 to vector<2x32xf32>
    %321 = arith.subf %320, %312 : vector<2x32xf32>
    %322 = arith.mulf %321, %319 : vector<2x32xf32>
    %323 = arith.mulf %312, %277 : vector<2x32xf32>
    %324 = arith.addf %322, %323 : vector<2x32xf32>
    %cst_64 = arith.constant dense<0.000000e+00> : vector<2x96xf32>
    %325 = tpu.matmul %301, %8, %cst_64 {dimension_numbers = #tpu.dot_dimension_numbers<[1], [0], [0], [1], [0, 0, 1, 1], [], []>} : vector<2x32xf32>, vector<32x96xf32>, vector<2x96xf32> -> vector<2x96xf32>
    %cst_65 = arith.constant dense<0.000000e+00> : vector<2x96xf32>
    %326 = tpu.matmul %324, %7, %cst_65 {dimension_numbers = #tpu.dot_dimension_numbers<[1], [0], [0], [1], [0, 0, 1, 1], [], []>} : vector<2x32xf32>, vector<32x96xf32>, vector<2x96xf32> -> vector<2x96xf32>
    %327 = arith.addf %326, %14 : vector<2x96xf32>
    %328 = vector.extract_strided_slice %327 {offsets = [0, 0], sizes = [2, 64], strides = [1, 1]} : vector<2x96xf32> to vector<2x64xf32>
    %329 = vector.extract_strided_slice %325 {offsets = [0, 0], sizes = [2, 64], strides = [1, 1]} : vector<2x96xf32> to vector<2x64xf32>
    %330 = arith.addf %328, %329 : vector<2x64xf32>
    %331 = arith.negf %330 : vector<2x64xf32>
    %332 = math.exp %331 : vector<2x64xf32>
    %cst_66 = arith.constant 1.000000e+00 : f32
    %333 = vector.broadcast %cst_66 : f32 to vector<2x64xf32>
    %334 = arith.addf %333, %332 : vector<2x64xf32>
    %335 = arith.divf %333, %334 : vector<2x64xf32>
    %336 = vector.extract_strided_slice %335 {offsets = [0, 32], sizes = [2, 32], strides = [1, 1]} : vector<2x64xf32> to vector<2x32xf32>
    %337 = vector.extract_strided_slice %327 {offsets = [0, 64], sizes = [2, 32], strides = [1, 1]} : vector<2x96xf32> to vector<2x32xf32>
    %338 = vector.extract_strided_slice %335 {offsets = [0, 0], sizes = [2, 32], strides = [1, 1]} : vector<2x64xf32> to vector<2x32xf32>
    %339 = vector.extract_strided_slice %325 {offsets = [0, 64], sizes = [2, 32], strides = [1, 1]} : vector<2x96xf32> to vector<2x32xf32>
    %340 = arith.addf %339, %17 : vector<2x32xf32>
    %341 = arith.mulf %338, %340 : vector<2x32xf32>
    %342 = arith.addf %337, %341 : vector<2x32xf32>
    %343 = math.tanh %342 : vector<2x32xf32>
    %cst_67 = arith.constant 1.000000e+00 : f32
    %344 = vector.broadcast %cst_67 : f32 to vector<2x32xf32>
    %345 = arith.subf %344, %336 : vector<2x32xf32>
    %346 = arith.mulf %345, %343 : vector<2x32xf32>
    %347 = arith.mulf %336, %301 : vector<2x32xf32>
    %348 = arith.addf %346, %347 : vector<2x32xf32>
    %349 = vector.extract_strided_slice %5 {offsets = [14, 0], sizes = [2, 96], strides = [1, 1]} : vector<16x96xf32> to vector<2x96xf32>
    %cst_68 = arith.constant dense<0.000000e+00> : vector<2x96xf32>
    %350 = tpu.matmul %324, %6, %cst_68 {dimension_numbers = #tpu.dot_dimension_numbers<[1], [0], [0], [1], [0, 0, 1, 1], [], []>} : vector<2x32xf32>, vector<32x96xf32>, vector<2x96xf32> -> vector<2x96xf32>
    %351 = vector.extract_strided_slice %349 {offsets = [0, 0], sizes = [2, 64], strides = [1, 1]} : vector<2x96xf32> to vector<2x64xf32>
    %352 = vector.extract_strided_slice %350 {offsets = [0, 0], sizes = [2, 64], strides = [1, 1]} : vector<2x96xf32> to vector<2x64xf32>
    %353 = arith.addf %351, %352 : vector<2x64xf32>
    %354 = arith.negf %353 : vector<2x64xf32>
    %355 = math.exp %354 : vector<2x64xf32>
    %cst_69 = arith.constant 1.000000e+00 : f32
    %356 = vector.broadcast %cst_69 : f32 to vector<2x64xf32>
    %357 = arith.addf %356, %355 : vector<2x64xf32>
    %358 = arith.divf %356, %357 : vector<2x64xf32>
    %359 = vector.extract_strided_slice %358 {offsets = [0, 32], sizes = [2, 32], strides = [1, 1]} : vector<2x64xf32> to vector<2x32xf32>
    %360 = vector.extract_strided_slice %349 {offsets = [0, 64], sizes = [2, 32], strides = [1, 1]} : vector<2x96xf32> to vector<2x32xf32>
    %361 = vector.extract_strided_slice %358 {offsets = [0, 0], sizes = [2, 32], strides = [1, 1]} : vector<2x64xf32> to vector<2x32xf32>
    %362 = vector.extract_strided_slice %350 {offsets = [0, 64], sizes = [2, 32], strides = [1, 1]} : vector<2x96xf32> to vector<2x32xf32>
    %363 = arith.addf %362, %11 : vector<2x32xf32>
    %364 = arith.mulf %361, %363 : vector<2x32xf32>
    %365 = arith.addf %360, %364 : vector<2x32xf32>
    %366 = math.tanh %365 : vector<2x32xf32>
    %cst_70 = arith.constant 1.000000e+00 : f32
    %367 = vector.broadcast %cst_70 : f32 to vector<2x32xf32>
    %368 = arith.subf %367, %359 : vector<2x32xf32>
    %369 = arith.mulf %368, %366 : vector<2x32xf32>
    %370 = arith.mulf %359, %324 : vector<2x32xf32>
    %371 = arith.addf %369, %370 : vector<2x32xf32>
    %cst_71 = arith.constant dense<0.000000e+00> : vector<2x96xf32>
    %372 = tpu.matmul %348, %8, %cst_71 {dimension_numbers = #tpu.dot_dimension_numbers<[1], [0], [0], [1], [0, 0, 1, 1], [], []>} : vector<2x32xf32>, vector<32x96xf32>, vector<2x96xf32> -> vector<2x96xf32>
    %cst_72 = arith.constant dense<0.000000e+00> : vector<2x96xf32>
    %373 = tpu.matmul %371, %7, %cst_72 {dimension_numbers = #tpu.dot_dimension_numbers<[1], [0], [0], [1], [0, 0, 1, 1], [], []>} : vector<2x32xf32>, vector<32x96xf32>, vector<2x96xf32> -> vector<2x96xf32>
    %374 = arith.addf %373, %14 : vector<2x96xf32>
    %375 = vector.extract_strided_slice %374 {offsets = [0, 0], sizes = [2, 64], strides = [1, 1]} : vector<2x96xf32> to vector<2x64xf32>
    %376 = vector.extract_strided_slice %372 {offsets = [0, 0], sizes = [2, 64], strides = [1, 1]} : vector<2x96xf32> to vector<2x64xf32>
    %377 = arith.addf %375, %376 : vector<2x64xf32>
    %378 = arith.negf %377 : vector<2x64xf32>
    %379 = math.exp %378 : vector<2x64xf32>
    %cst_73 = arith.constant 1.000000e+00 : f32
    %380 = vector.broadcast %cst_73 : f32 to vector<2x64xf32>
    %381 = arith.addf %380, %379 : vector<2x64xf32>
    %382 = arith.divf %380, %381 : vector<2x64xf32>
    %383 = vector.extract_strided_slice %382 {offsets = [0, 32], sizes = [2, 32], strides = [1, 1]} : vector<2x64xf32> to vector<2x32xf32>
    %384 = vector.extract_strided_slice %374 {offsets = [0, 64], sizes = [2, 32], strides = [1, 1]} : vector<2x96xf32> to vector<2x32xf32>
    %385 = vector.extract_strided_slice %382 {offsets = [0, 0], sizes = [2, 32], strides = [1, 1]} : vector<2x64xf32> to vector<2x32xf32>
    %386 = vector.extract_strided_slice %372 {offsets = [0, 64], sizes = [2, 32], strides = [1, 1]} : vector<2x96xf32> to vector<2x32xf32>
    %387 = arith.addf %386, %17 : vector<2x32xf32>
    %388 = arith.mulf %385, %387 : vector<2x32xf32>
    %389 = arith.addf %384, %388 : vector<2x32xf32>
    %390 = math.tanh %389 : vector<2x32xf32>
    %cst_74 = arith.constant 1.000000e+00 : f32
    %391 = vector.broadcast %cst_74 : f32 to vector<2x32xf32>
    %392 = arith.subf %391, %383 : vector<2x32xf32>
    %393 = arith.mulf %392, %390 : vector<2x32xf32>
    %394 = arith.mulf %383, %348 : vector<2x32xf32>
    %395 = arith.addf %393, %394 : vector<2x32xf32>
    %c0_75 = arith.constant 0 : index
    %c0_76 = arith.constant 0 : index
    %396 = vector.load %arg9[%c0_75, %c0_76] : memref<32x1xf32, #tpu.memory_space<vmem>>, vector<32x1xf32>
    %cst_77 = arith.constant dense<0.000000e+00> : vector<2x1xf32>
    %397 = tpu.matmul %395, %396, %cst_77 {dimension_numbers = #tpu.dot_dimension_numbers<[1], [0], [0], [1], [0, 0, 1, 1], [], []>} : vector<2x32xf32>, vector<32x1xf32>, vector<2x1xf32> -> vector<2x1xf32>
    %c0_78 = arith.constant 0 : index
    %c0_79 = arith.constant 0 : index
    %398 = vector.load %arg10[%c0_78, %c0_79] : memref<1x1xf32, #tpu.memory_space<vmem>>, vector<1x1xf32>
    %399 = vector.broadcast %398 : vector<1x1xf32> to vector<2x1xf32>
    %400 = arith.addf %397, %399 : vector<2x1xf32>
    %401 = arith.negf %400 : vector<2x1xf32>
    %402 = math.exp %401 : vector<2x1xf32>
    %cst_80 = arith.constant 1.000000e+00 : f32
    %403 = vector.broadcast %cst_80 : f32 to vector<2x1xf32>
    %404 = arith.addf %403, %402 : vector<2x1xf32>
    %405 = arith.divf %403, %404 : vector<2x1xf32>
    %c0_81 = arith.constant 0 : index
    %c0_82 = arith.constant 0 : index
    %406 = vector.load %arg11[%c0_81, %c0_82] : memref<2x1xf32, #tpu.memory_space<vmem>>, vector<2x1xf32>
    tpu.vector_store %arg11[%c0_81, %c0_82], %405 {strides = array<i32>} : memref<2x1xf32, #tpu.memory_space<vmem>>, vector<2x1xf32>,
    return
  }
}

</mosaic_0001>

<bundles_post_ra>
// kernel: gru_forward.1
= control target key start
LH: loop header
LB: loop body
LE: loop exit
PB: predicated region body
PF: predicated region fallthrough
CT: control target
= control target key end

     0   :  { %vm4877_vm0 = vmmov 0   ;;  %s4878_s25 = smov 96   ;;  %vm1527_vm1 = vcmask 261120   ;;  %vm3859_vm2 = vcmask 1024   ;;  %s5940_s1 = inlined_call_operand.vmem [shape: bf16[2048,96], index: 1, kind: input, shape index: {}]   ;;  %s5941_s0 = inlined_call_operand.vmem [shape: bf16[16,2048], index: 0, kind: input, shape index: {}]   ;;  %s5942_s3 = inlined_call_operand.vmem [shape: f32[32,96], index: 3, kind: input, shape index: {}]   ;;  %s5943_s4 = inlined_call_operand.vmem [shape: f32[1,32], index: 4, kind: input, shape index: {}]   ;;  %s5944_s2 = inlined_call_operand.vmem [shape: f32[1,96], index: 2, kind: input, shape index: {}]   ;;  %s5945_s7 = inlined_call_operand.vmem [shape: f32[32,96], index: 7, kind: input, shape index: {}]   ;;  %s5946_s5 = inlined_call_operand.vmem [shape: f32[32,96], index: 5, kind: input, shape index: {}]   ;;  %s5947_s8 = inlined_call_operand.vmem [shape: f32[1,32], index: 8, kind: input, shape index: {}]   ;;  %s5948_s6 = inlined_call_operand.vmem [shape: f32[1,96], index: 6, kind: input, shape index: {}]   ;;  %s5949_s9 = inlined_call_operand.vmem [shape: f32[32,1], index: 9, kind: input, shape index: {}]   ;;  %s5950_s10 = inlined_call_operand.<no memory space> [shape: f32[1,1], index: 10, kind: input, shape index: {}]   ;;  %s5951_s11 = inlined_call_operand.vmem [shape: f32[2,1], index: 11, kind: output, shape index: {}]  }
   0x1   :  { %v4634_v0 = vld [vmem:[%s5940_s1 + $0x78] sm:$0xff]   ;;  %v4638_v4 = vld [vmem:[%s5940_s1 + $0x70] sm:$0xff]   ;;  %v4642_v8 = vld [vmem:[%s5940_s1 + $0x68] sm:$0xff]  }
   0x2   :  { %v4635_v1 = vld [vmem:[%s5940_s1 + $0x38] sm:$0xff]   ;;  %4054 = vmatprep.subr.bf16.mxu0 %v4634_v0  ;;  %v4639_v5 = vld [vmem:[%s5940_s1 + $0x30] sm:$0xff]   ;;  %v4643_v9 = vld [vmem:[%s5940_s1 + $0x28] sm:$0xff]  }
   0x3   :  { %v4636_v2 = vld [vmem:[%s5940_s1 + $0xf8] sm:$0xff]   ;;  %4055 = vmatpush3.bf16.msra.mxu0 %v4635_v1  ;;  %v4640_v6 = vld [vmem:[%s5940_s1 + $0xf0] sm:$0xff]   ;;  %v4644_v10 = vld [vmem:[%s5940_s1 + $0xe8] sm:$0xff]  }
   0x4   :  { %v4637_v3 = vld [vmem:[%s5940_s1 + $0xb8] sm:$0xff]   ;;  %4076 = vmatprep.subr.bf16.mxu1 %v4636_v2  ;;  %4056 = vmatprep.subr.bf16.mxu0 %v4638_v4  ;;  %v4641_v7 = vld [vmem:[%s5940_s1 + $0xb0] sm:$0xff]   ;;  %v4645_v11 = vld [vmem:[%s5940_s1 + $0xa8] sm:$0xff]  }
   0x5   :  { %4077 = vmatpush3.bf16.msra.mxu1 %v4637_v3  ;;  %v4646_v12 = vld [vmem:[%s5940_s1 + $0x60] sm:$0xff]   ;;  %v4650_v16 = vld [vmem:[%s5940_s1 + $0x58] sm:$0xff]   ;;  %v4654_v20 = vld [vmem:[%s5940_s1 + $0x50] sm:$0xff]  }
   0x6   :  { %4078 = vmatprep.subr.bf16.mxu1 %v4640_v6  ;;  %v4647_v13 = vld [vmem:[%s5940_s1 + $0x20] sm:$0xff]   ;;  %v4651_v17 = vld [vmem:[%s5940_s1 + $0x18] sm:$0xff]   ;;  %v4655_v21 = vld [vmem:[%s5940_s1 + $0x10] sm:$0xff]  }
   0x7   :  { %4057 = vmatpush3.bf16.msra.mxu0 %v4639_v5  ;;  %v4648_v14 = vld [vmem:[%s5940_s1 + $0xe0] sm:$0xff]   ;;  %v4652_v18 = vld [vmem:[%s5940_s1 + $0xd8] sm:$0xff]   ;;  %v4656_v22 = vld [vmem:[%s5940_s1 + $0xd0] sm:$0xff]  }
   0x8   :  { %4058 = vmatprep.subr.bf16.mxu0 %v4642_v8  ;;  %v4649_v15 = vld [vmem:[%s5940_s1 + $0xa0] sm:$0xff]   ;;  %v4653_v19 = vld [vmem:[%s5940_s1 + $0x98] sm:$0xff]   ;;  %v4657_v23 = vld [vmem:[%s5940_s1 + $0x90] sm:$0xff]  }
   0x9   :  { %4079 = vmatpush3.bf16.msra.mxu1 %v4641_v7  ;;  %v4658_v24 = vld [vmem:[%s5940_s1 + $0x48] sm:$0xff]   ;;  %v4662_v28 = vld [vmem:[%s5940_s1 + $0x40] sm:$0xff]   ;;  %v4666_v36 = vld [vmem:[%s5940_s1 + $0x178] sm:$0xff]  }
   0xa   :  { %4080 = vmatprep.subr.bf16.mxu1 %v4644_v10  ;;  %v4659_v25 = vld [vmem:[%s5940_s1 + $0x8] sm:$0xff]   ;;  %v4663_v29 = vld [vmem:[%s5940_s1] sm:$0xff]   ;;  %v4667_v41 = vld [vmem:[%s5940_s1 + $0x138] sm:$0xff]  }
   0xb   :  { %4059 = vmatpush3.bf16.msra.mxu0 %v4643_v9  ;;  %v4660_v26 = vld [vmem:[%s5940_s1 + $0xc8] sm:$0xff]   ;;  %v4664_v30 = vld [vmem:[%s5940_s1 + $0xc0] sm:$0xff]   ;;  %v4668_v42 = vld [vmem:[%s5940_s1 + $0x1f8] sm:$0xff]  }
   0xc   :  { %4060 = vmatprep.subr.bf16.mxu0 %v4646_v12  ;;  %v4661_v27 = vld [vmem:[%s5940_s1 + $0x88] sm:$0xff]   ;;  %v41_v31 = vld [vmem:[%s5941_s0] sm:$0xff]  ;;  %v4669_v43 = vld [vmem:[%s5940_s1 + $0x1b8] sm:$0xff]  }
   0xd   :  { %4081 = vmatpush3.bf16.msra.mxu1 %v4645_v11  ;;  %v49_v32 = vld [vmem:[%s5941_s0 + $0x40] sm:$0xff]  ;;  %v42_v37 = vld [vmem:[%s5941_s0 + $0x8] sm:$0xff]  ;;  %v4670_v44 = vld [vmem:[%s5940_s1 + $0x170] sm:$0xff]  }
   0xe   :  { %4082 = vmatprep.subr.bf16.mxu1 %v4648_v14  ;;  %v3866_v33 = vcombine.low %v41_v31, %v49_v32  ;;  %v3867_v34 = vcombine.high %v41_v31, %v49_v32  ;;  %v4665_v35 = vld [vmem:[%s5940_s1 + $0x80] sm:$0xff]   ;;  %v50_v38 = vld [vmem:[%s5941_s0 + $0x48] sm:$0xff]  ;;  %v4671_v45 = vld [vmem:[%s5940_s1 + $0x130] sm:$0xff]  }
   0xf   :  { %4061 = vmatpush3.bf16.msra.mxu0 %v4647_v13  ;;  %v3868_v39 = vcombine.low %v42_v37, %v50_v38  ;;  %v3869_v40 = vcombine.high %v42_v37, %v50_v38  ;;  %v4672_v46 = vld [vmem:[%s5940_s1 + $0x1f0] sm:$0xff]   ;;  %v4674_v48 = vld [vmem:[%s5940_s1 + $0x168] sm:$0xff]   ;;  %v4678_v52 = vld [vmem:[%s5940_s1 + $0x160] sm:$0xff]  }
  0x10   :  { %4062 = vmatprep.subr.bf16.mxu0 %v4650_v16  ;;  %1200 = vmatprep.mubr.bf16.mxu0 %v3867_v34  ;;  %v4673_v47 = vld [vmem:[%s5940_s1 + $0x1b0] sm:$0xff]   ;;  %v4675_v49 = vld [vmem:[%s5940_s1 + $0x128] sm:$0xff]   ;;  %v4679_v53 = vld [vmem:[%s5940_s1 + $0x120] sm:$0xff]  }
  0x11   :  { %4083 = vmatpush3.bf16.msra.mxu1 %v4649_v15  ;;  %1241 = vmatprep.mubr.bf16.mxu1 %v3869_v40  ;;  %v4676_v50 = vld [vmem:[%s5940_s1 + $0x1e8] sm:$0xff]   ;;  %v4680_v54 = vld [vmem:[%s5940_s1 + $0x1e0] sm:$0xff]   ;;  %v4682_v56 = vld [vmem:[%s5940_s1 + $0x158] sm:$0xff]  }
  0x12   :  { %4084 = vmatprep.subr.bf16.mxu1 %v4652_v18  ;;  %v4677_v51 = vld [vmem:[%s5940_s1 + $0x1a8] sm:$0xff]   ;;  %v4681_v55 = vld [vmem:[%s5940_s1 + $0x1a0] sm:$0xff]   ;;  %v4683_v57 = vld [vmem:[%s5940_s1 + $0x118] sm:$0xff]  }
  0x13   :  { %4063 = vmatpush3.bf16.msra.mxu0 %v4651_v17  ;;  %v4684_v58 = vld [vmem:[%s5940_s1 + $0x1d8] sm:$0xff]   ;;  %v4686_v60 = vld [vmem:[%s5940_s1 + $0x150] sm:$0xff]   ;;  %v4690_v0 = vld [vmem:[%s5940_s1 + $0x148] sm:$0xff]  }
  0x14   :  { %4064 = vmatprep.subr.bf16.mxu0 %v4654_v20  ;;  %v4685_v59 = vld [vmem:[%s5940_s1 + $0x198] sm:$0xff]   ;;  %v4687_v61 = vld [vmem:[%s5940_s1 + $0x110] sm:$0xff]   ;;  %v4691_v1 = vld [vmem:[%s5940_s1 + $0x108] sm:$0xff]  }
  0x15   :  { %4085 = vmatpush3.bf16.msra.mxu1 %v4653_v19  ;;  %v4688_v62 = vld [vmem:[%s5940_s1 + $0x1d0] sm:$0xff]   ;;  %v4692_v2 = vld [vmem:[%s5940_s1 + $0x1c8] sm:$0xff]   ;;  %v4694_v4 = vld [vmem:[%s5940_s1 + $0x140] sm:$0xff]  }
  0x16   :  { %4086 = vmatprep.subr.bf16.mxu1 %v4656_v22  ;;  %v4689_v63 = vld [vmem:[%s5940_s1 + $0x190] sm:$0xff]   ;;  %v4693_v3 = vld [vmem:[%s5940_s1 + $0x188] sm:$0xff]   ;;  %v4695_v5 = vld [vmem:[%s5940_s1 + $0x100] sm:$0xff]  }
  0x17   :  { %4065 = vmatpush3.bf16.msra.mxu0 %v4655_v21  ;;  %v4696_v6 = vld [vmem:[%s5940_s1 + $0x1c0] sm:$0xff]   ;;  %v43_v7 = vld [vmem:[%s5941_s0 + $0x10] sm:$0xff]  ;;  %v4698_v12 = vld [vmem:[%s5940_s1 + $0x278] sm:$0xff]  }
  0x18   :  { %4066 = vmatprep.subr.bf16.mxu0 %v4658_v24  ;;  %v51_v8 = vld [vmem:[%s5941_s0 + $0x50] sm:$0xff]  ;;  %v4697_v11 = vld [vmem:[%s5940_s1 + $0x180] sm:$0xff]   ;;  %v44_v13 = vld [vmem:[%s5941_s0 + $0x18] sm:$0xff] }
  0x19   :  { %4087 = vmatpush3.bf16.msra.mxu1 %v4657_v23  ;;  %v3870_v9 = vcombine.low %v43_v7, %v51_v8  ;;  %v3871_v10 = vcombine.high %v43_v7, %v51_v8  ;;  %v52_v14 = vld [vmem:[%s5941_s0 + $0x58] sm:$0xff]  ;;  %v4702_v20 = vld [vmem:[%s5940_s1 + $0x270] sm:$0xff]   ;;  %v4706_v24 = vld [vmem:[%s5940_s1 + $0x268] sm:$0xff]  }
  0x1a   :  { %4088 = vmatprep.subr.bf16.mxu1 %v4660_v26  ;;  %v3872_v15 = vcombine.low %v44_v13, %v52_v14  ;;  %v3873_v16 = vcombine.high %v44_v13, %v52_v14  ;;  %v4699_v17 = vld [vmem:[%s5940_s1 + $0x238] sm:$0xff]   ;;  %v4703_v21 = vld [vmem:[%s5940_s1 + $0x230] sm:$0xff]   ;;  %v4708_v26 = vld [vmem:[%s5940_s1 + $0x2e8] sm:$0xff]  }
  0x1b   :  { %4067 = vmatpush3.bf16.msra.mxu0 %v4659_v25  ;;  %v4700_v18 = vld [vmem:[%s5940_s1 + $0x2f8] sm:$0xff]   ;;  %v4704_v22 = vld [vmem:[%s5940_s1 + $0x2f0] sm:$0xff]   ;;  %v4707_v25 = vld [vmem:[%s5940_s1 + $0x228] sm:$0xff]  }
  0x1c   :  { %4068 = vmatprep.subr.bf16.mxu0 %v4662_v28  ;;  %v4701_v19 = vld [vmem:[%s5940_s1 + $0x2b8] sm:$0xff]   ;;  %v4705_v23 = vld [vmem:[%s5940_s1 + $0x2b0] sm:$0xff]   ;;  %v4710_v28 = vld [vmem:[%s5940_s1 + $0x260] sm:$0xff]  }
  0x1d   :  { %4089 = vmatpush3.bf16.msra.mxu1 %v4661_v27  ;;  %v4709_v27 = vld [vmem:[%s5940_s1 + $0x2a8] sm:$0xff]   ;;  %v4713_v31 = vld [vmem:[%s5940_s1 + $0x2a0] sm:$0xff]   ;;  %v4714_v32 = vld [vmem:[%s5940_s1 + $0x258] sm:$0xff]  }
  0x1e   :  { %4090 = vmatprep.subr.bf16.mxu1 %v4664_v30  ;;  %v4712_v30 = vld [vmem:[%s5940_s1 + $0x2e0] sm:$0xff]   ;;  %v4716_v34 = vld [vmem:[%s5940_s1 + $0x2d8] sm:$0xff]   ;;  %v4719_v37 = vld [vmem:[%s5940_s1 + $0x210] sm:$0xff]  }
  0x1f   :  { %4069 = vmatpush3.bf16.msra.mxu0 %v4663_v29  ;;  %v4711_v29 = vld [vmem:[%s5940_s1 + $0x220] sm:$0xff]   ;;  %v4720_v38 = vld [vmem:[%s5940_s1 + $0x2d0] sm:$0xff]   ;;  %v4722_v40 = vld [vmem:[%s5940_s1 + $0x248] sm:$0xff]  }
  0x20   :  { %4098 = vmatprep.subr.bf16.mxu0 %v4666_v36  ;;  %v4718_v36 = vld [vmem:[%s5940_s1 + $0x250] sm:$0xff]   ;;  %v4745_v7 = vld [vmem:[%s5940_s1 + $0x3a0] sm:$0xff]   ;;  %v4746_v8 = vld [vmem:[%s5940_s1 + $0x358] sm:$0xff]  }
  0x21   :  { %4091 = vmatpush3.bf16.msra.mxu1 %v4665_v35  ;;  %v4717_v35 = vld [vmem:[%s5940_s1 + $0x298] sm:$0xff]   ;;  %v4751_v13 = vld [vmem:[%s5940_s1 + $0x310] sm:$0xff]  }
  0x22   :  { %1201 = vmatmul.mubr.bf16.vlgmr.msra.gmra.mxu0 %v3866_v33  ;;  %4120 = vmatprep.subr.bf16.mxu1 %v4668_v42  ;;  %v4715_v33 = vld [vmem:[%s5940_s1 + $0x218] sm:$0xff]   ;;  %v4724_v42 = vld [vmem:[%s5940_s1 + $0x2c8] sm:$0xff]   ;;  %v4752_v14 = vld [vmem:[%s5940_s1 + $0x3d0] sm:$0xff]  }
  0x23   :  { %4099 = vmatpush3.bf16.msra.mxu0 %v4667_v41  ;;  %1282 = vmatprep.mubr.bf16.mxu0 %v3871_v10  ;;  %v4723_v41 = vld [vmem:[%s5940_s1 + $0x208] sm:$0xff]   ;;  %v4748_v10 = vld [vmem:[%s5940_s1 + $0x3d8] sm:$0xff]  }
  0x24   :  { %1242 = vmatmul.mubr.bf16.vlgmr.msra.gmra.mxu1 %v3868_v39  ;;  %4100 = vmatprep.subr.bf16.mxu0 %v4670_v44  ;;  %v4721_v39 = vld [vmem:[%s5940_s1 + $0x290] sm:$0xff]   ;;  %v4726_v44 = vld [vmem:[%s5940_s1 + $0x240] sm:$0xff]  }
  0x25   :  { %4121 = vmatpush3.bf16.msra.mxu1 %v4669_v43  ;;  %1323 = vmatprep.mubr.bf16.mxu1 %v3873_v16  ;;  %v4725_v43 = vld [vmem:[%s5940_s1 + $0x288] sm:$0xff]  }
  0x26   :  { %4122 = vmatprep.subr.bf16.mxu1 %v4672_v46  ;;  %v4728_v46 = vld [vmem:[%s5940_s1 + $0x2c0] sm:$0xff]   ;;  %v4754_v16 = vld [vmem:[%s5940_s1 + $0x348] sm:$0xff]  }
  0x27   :  { %4101 = vmatpush3.bf16.msra.mxu0 %v4671_v45  ;;  %v4727_v45 = vld [vmem:[%s5940_s1 + $0x200] sm:$0xff]  }
  0x28   :  { %4102 = vmatprep.subr.bf16.mxu0 %v4674_v48  ;;  %v53_v48 = vld [vmem:[%s5941_s0 + $0x60] sm:$0xff] }
  0x29   :  { %4123 = vmatpush3.bf16.msra.mxu1 %v4673_v47  ;;  %v45_v47 = vld [vmem:[%s5941_s0 + $0x20] sm:$0xff] }
  0x2a   :  { %4124 = vmatprep.subr.bf16.mxu1 %v4676_v50  ;;  %v3875_v50 = vcombine.high %v45_v47, %v53_v48 }
  0x2b   :  { %4103 = vmatpush3.bf16.msra.mxu0 %v4675_v49  ;;  %v3874_v49 = vcombine.low %v45_v47, %v53_v48  ;;  %v3865_v47 = vld [vmem:[%s5944_s2] ss:$0 sm:$0xff] }
  0x2c   :  { %4104 = vmatprep.subr.bf16.mxu0 %v4678_v52  ;;  %v4730_v52 = vld [vmem:[%s5940_s1 + $0x378] sm:$0xff]  }
  0x2d   :  { %4125 = vmatpush3.bf16.msra.mxu1 %v4677_v51  ;;  %v4729_v51 = vld [vmem:[%s5940_s1 + $0x280] sm:$0xff]  }
  0x2e   :  { %4126 = vmatprep.subr.bf16.mxu1 %v4680_v54  ;;  %v54_v54 = vld [vmem:[%s5941_s0 + $0x68] sm:$0xff] }
  0x2f   :  { %4105 = vmatpush3.bf16.msra.mxu0 %v4679_v53  ;;  %v46_v53 = vld [vmem:[%s5941_s0 + $0x28] sm:$0xff] }
  0x30   :  { %4106 = vmatprep.subr.bf16.mxu0 %v4682_v56  ;;  %v3877_v56 = vcombine.high %v46_v53, %v54_v54 }
  0x31   :  { %4127 = vmatpush3.bf16.msra.mxu1 %v4681_v55  ;;  %v3876_v55 = vcombine.low %v46_v53, %v54_v54 }
  0x32   :  { %4128 = vmatprep.subr.bf16.mxu1 %v4684_v58  ;;  %v4732_v58 = vld [vmem:[%s5940_s1 + $0x3f8] sm:$0xff]  }
  0x33   :  { %4107 = vmatpush3.bf16.msra.mxu0 %v4683_v57  ;;  %v4731_v57 = vld [vmem:[%s5940_s1 + $0x338] sm:$0xff]  }
  0x34   :  { %4108 = vmatprep.subr.bf16.mxu0 %v4686_v60  ;;  %v4734_v60 = vld [vmem:[%s5940_s1 + $0x370] sm:$0xff]  }
  0x35   :  { %4129 = vmatpush3.bf16.msra.mxu1 %v4685_v59  ;;  %v4733_v59 = vld [vmem:[%s5940_s1 + $0x3b8] sm:$0xff]  }
  0x36   :  { %4130 = vmatprep.subr.bf16.mxu1 %v4688_v62  ;;  %v4736_v62 = vld [vmem:[%s5940_s1 + $0x3f0] sm:$0xff]  }
  0x37   :  { %4109 = vmatpush3.bf16.msra.mxu0 %v4687_v61  ;;  %v4735_v61 = vld [vmem:[%s5940_s1 + $0x330] sm:$0xff]  }
  0x38   :  { %4110 = vmatprep.subr.bf16.mxu0 %v4690_v0  ;;  %v4738_v0 = vld [vmem:[%s5940_s1 + $0x368] sm:$0xff]  }
  0x39   :  { %4131 = vmatpush3.bf16.msra.mxu1 %v4689_v63  ;;  %v4737_v63 = vld [vmem:[%s5940_s1 + $0x3b0] sm:$0xff]  }
  0x3a   :  { %4132 = vmatprep.subr.bf16.mxu1 %v4692_v2  ;;  %v4740_v2 = vld [vmem:[%s5940_s1 + $0x3e8] sm:$0xff]  }
  0x3b   :  { %4111 = vmatpush3.bf16.msra.mxu0 %v4691_v1  ;;  %v4739_v1 = vld [vmem:[%s5940_s1 + $0x328] sm:$0xff]  }
  0x3c   :  { %4112 = vmatprep.subr.bf16.mxu0 %v4694_v4  ;;  %v4742_v4 = vld [vmem:[%s5940_s1 + $0x360] sm:$0xff]  }
  0x3d   :  { %4133 = vmatpush3.bf16.msra.mxu1 %v4693_v3  ;;  %v4741_v3 = vld [vmem:[%s5940_s1 + $0x3a8] sm:$0xff]  }
  0x3e   :  { %4134 = vmatprep.subr.bf16.mxu1 %v4696_v6  ;;  %v4744_v6 = vld [vmem:[%s5940_s1 + $0x3e0] sm:$0xff]  }
  0x3f   :  { %4113 = vmatpush3.bf16.msra.mxu0 %v4695_v5  ;;  %v4743_v5 = vld [vmem:[%s5940_s1 + $0x320] sm:$0xff]  }
  0x40   :  { %4142 = vmatprep.subr.bf16.mxu0 %v4698_v12  ;;  %v4750_v12 = vld [vmem:[%s5940_s1 + $0x350] sm:$0xff]  }
  0x41   :  { %4135 = vmatpush3.bf16.msra.mxu1 %v4697_v11  ;;  %v4749_v11 = vld [vmem:[%s5940_s1 + $0x398] sm:$0xff]  }
  0x42   :  { %1283 = vmatmul.mubr.bf16.vlgmr.msra.gmra.mxu0 %v3870_v9  ;;  %4164 = vmatprep.subr.bf16.mxu1 %v4700_v18  ;;  %v4747_v9 = vld [vmem:[%s5940_s1 + $0x318] sm:$0xff]   ;;  %v4756_v18 = vld [vmem:[%s5940_s1 + $0x3c8] sm:$0xff]  }
  0x43   :  { %4143 = vmatpush3.bf16.msra.mxu0 %v4699_v17  ;;  %1364 = vmatprep.mubr.bf16.mxu0 %v3875_v50  ;;  %v4755_v17 = vld [vmem:[%s5940_s1 + $0x308] sm:$0xff]  }
  0x44   :  { %1324 = vmatmul.mubr.bf16.vlgmr.msra.gmra.mxu1 %v3872_v15  ;;  %4144 = vmatprep.subr.bf16.mxu0 %v4702_v20  ;;  %v4753_v15 = vld [vmem:[%s5940_s1 + $0x390] sm:$0xff]   ;;  %v4758_v20 = vld [vmem:[%s5940_s1 + $0x340] sm:$0xff]  }
  0x45   :  { %4165 = vmatpush3.bf16.msra.mxu1 %v4701_v19  ;;  %1405 = vmatprep.mubr.bf16.mxu1 %v3877_v56  ;;  %v4757_v19 = vld [vmem:[%s5940_s1 + $0x388] sm:$0xff]  }
  0x46   :  { %4166 = vmatprep.subr.bf16.mxu1 %v4704_v22  ;;  %v4760_v22 = vld [vmem:[%s5940_s1 + $0x3c0] sm:$0xff]  }
  0x47   :  { %4145 = vmatpush3.bf16.msra.mxu0 %v4703_v21  ;;  %v4759_v21 = vld [vmem:[%s5940_s1 + $0x300] sm:$0xff]  }
  0x48   :  { %4146 = vmatprep.subr.bf16.mxu0 %v4706_v24  ;;  %v55_v24 = vld [vmem:[%s5941_s0 + $0x70] sm:$0xff] }
  0x49   :  { %4167 = vmatpush3.bf16.msra.mxu1 %v4705_v23  ;;  %v47_v23 = vld [vmem:[%s5941_s0 + $0x30] sm:$0xff] }
  0x4a   :  { %4168 = vmatprep.subr.bf16.mxu1 %v4708_v26  ;;  %v3879_v26 = vcombine.high %v47_v23, %v55_v24 }
  0x4b   :  { %4147 = vmatpush3.bf16.msra.mxu0 %v4707_v25  ;;  %v3878_v25 = vcombine.low %v47_v23, %v55_v24 }
  0x4c   :  { %4148 = vmatprep.subr.bf16.mxu0 %v4710_v28  ;;  %v4875_v28 = vmov 0.0  }
  0x4d   :  { %4169 = vmatpush3.bf16.msra.mxu1 %v4709_v27  ;;  %v4761_v27 = vld [vmem:[%s5940_s1 + $0x380] sm:$0xff]  }
  0x4e   :  { %4170 = vmatprep.subr.bf16.mxu1 %v4712_v30  ;;  %v56_v30 = vld [vmem:[%s5941_s0 + $0x78] sm:$0xff] }
  0x4f   :  { %4149 = vmatpush3.bf16.msra.mxu0 %v4711_v29  ;;  %v48_v29 = vld [vmem:[%s5941_s0 + $0x38] sm:$0xff]  ;;  %s4876_s0 = smov 64  }
  0x50   :  { %4150 = vmatprep.subr.bf16.mxu0 %v4714_v32  ;;  %v3880_v32 = vcombine.low %v48_v29, %v56_v30 }
  0x51   :  { %4171 = vmatpush3.bf16.msra.mxu1 %v4713_v31  ;;  %v5375_v31 = vld [vmem:[%s5942_s3 + $0x18] sm:$0xff] }
  0x52   :  { %4172 = vmatprep.subr.bf16.mxu1 %v4716_v34  ;;  %v4010_v34 = vld [vmem:[%s5943_s4] ss:$0 sm:$0xff] }
  0x53   :  { %4151 = vmatpush3.bf16.msra.mxu0 %v4715_v33  ;;  %v3881_v33 = vcombine.high %v48_v29, %v56_v30  ;;  %1608 = vrot.lane.b32.xlu0 %v4010_v34, %s4876_s0 }
  0x54   :  { %4152 = vmatprep.subr.bf16.mxu0 %v4718_v36  ;;  %v5391_v36 = vld [vmem:[%s5942_s3 + $0x8] sm:$0xff] }
  0x55   :  { %4173 = vmatpush3.bf16.msra.mxu1 %v4717_v35  ;;  %v5383_v35 = vld [vmem:[%s5942_s3 + $0x10] sm:$0xff] }
  0x56   :  { %4174 = vmatprep.subr.bf16.mxu1 %v4720_v38 }
  0x57   :  { %4153 = vmatpush3.bf16.msra.mxu0 %v4719_v37  ;;  %v5400_v37 = vld [vmem:[%s5942_s3] sm:$0xff] }
  0x58   :  { %4154 = vmatprep.subr.bf16.mxu0 %v4722_v40 }
  0x59   :  { %4175 = vmatpush3.bf16.msra.mxu1 %v4721_v39 }
  0x5a   :  { %4176 = vmatprep.subr.bf16.mxu1 %v4724_v42 }
  0x5b   :  { %4155 = vmatpush3.bf16.msra.mxu0 %v4723_v41 }
  0x5c   :  { %4156 = vmatprep.subr.bf16.mxu0 %v4726_v44 }
  0x5d   :  { %4177 = vmatpush3.bf16.msra.mxu1 %v4725_v43 }
  0x5e   :  { %4178 = vmatprep.subr.bf16.mxu1 %v4728_v46 }
  0x5f   :  { %4157 = vmatpush3.bf16.msra.mxu0 %v4727_v45 }
  0x60   :  { %4186 = vmatprep.subr.bf16.mxu0 %v4730_v52 }
  0x61   :  { %4179 = vmatpush3.bf16.msra.mxu1 %v4729_v51 }
  0x62   :  { %1365 = vmatmul.mubr.bf16.vlgmr.msra.gmra.mxu0 %v3874_v49  ;;  %4208 = vmatprep.subr.bf16.mxu1 %v4732_v58 }
  0x63   :  { %4187 = vmatpush3.bf16.msra.mxu0 %v4731_v57  ;;  %1446 = vmatprep.mubr.bf16.mxu0 %v3879_v26 }
  0x64   :  { %1406 = vmatmul.mubr.bf16.vlgmr.msra.gmra.mxu1 %v3876_v55  ;;  %4188 = vmatprep.subr.bf16.mxu0 %v4734_v60 }
  0x65   :  { %4209 = vmatpush3.bf16.msra.mxu1 %v4733_v59  ;;  %1487 = vmatprep.mubr.bf16.mxu1 %v3881_v33 }
  0x66   :  { %4210 = vmatprep.subr.bf16.mxu1 %v4736_v62 }
  0x67   :  { %4189 = vmatpush3.bf16.msra.mxu0 %v4735_v61 }
  0x68   :  { %4190 = vmatprep.subr.bf16.mxu0 %v4738_v0 }
  0x69   :  { %4211 = vmatpush3.bf16.msra.mxu1 %v4737_v63 }
  0x6a   :  { %4212 = vmatprep.subr.bf16.mxu1 %v4740_v2 }
  0x6b   :  { %4191 = vmatpush3.bf16.msra.mxu0 %v4739_v1 }
  0x6c   :  { %4192 = vmatprep.subr.bf16.mxu0 %v4742_v4 }
  0x6d   :  { %4213 = vmatpush3.bf16.msra.mxu1 %v4741_v3 }
  0x6e   :  { %4214 = vmatprep.subr.bf16.mxu1 %v4744_v6 }
  0x6f   :  { %4193 = vmatpush3.bf16.msra.mxu0 %v4743_v5 }
  0x70   :  { %4194 = vmatprep.subr.bf16.mxu0 %v4746_v8 }
  0x71   :  { %4215 = vmatpush3.bf16.msra.mxu1 %v4745_v7 }
  0x72   :  { %4216 = vmatprep.subr.bf16.mxu1 %v4748_v10 }
  0x73   :  { %4195 = vmatpush3.bf16.msra.mxu0 %v4747_v9 }
  0x74   :  { %4196 = vmatprep.subr.bf16.mxu0 %v4750_v12 }
  0x75   :  { %4217 = vmatpush3.bf16.msra.mxu1 %v4749_v11 }
  0x76   :  { %4218 = vmatprep.subr.bf16.mxu1 %v4752_v14 }
  0x77   :  { %4197 = vmatpush3.bf16.msra.mxu0 %v4751_v13 }
  0x78   :  { %4198 = vmatprep.subr.bf16.mxu0 %v4754_v16 }
  0x79   :  { %4219 = vmatpush3.bf16.msra.mxu1 %v4753_v15 }
  0x7a   :  { %4220 = vmatprep.subr.bf16.mxu1 %v4756_v18 }
  0x7b   :  { %4199 = vmatpush3.bf16.msra.mxu0 %v4755_v17 }
  0x7c   :  { %4200 = vmatprep.subr.bf16.mxu0 %v4758_v20 }
  0x7d   :  { %4221 = vmatpush3.bf16.msra.mxu1 %v4757_v19 }
  0x7e   :  { %4222 = vmatprep.subr.bf16.mxu1 %v4760_v22 }
  0x7f   :  { %4201 = vmatpush3.bf16.msra.mxu0 %v4759_v21 }
  0x80   :  { %4355 = vmatprep.subr.mxu0 %v4875_v28 }
  0x81   :  { %4223 = vmatpush3.bf16.msra.mxu1 %v4761_v27 }
  0x82   :  { %1447 = vmatmul.mubr.bf16.vlgmr.msra.gmra.mxu0 %v3878_v25  ;;  %4366 = vmatprep.subr.mxu1 %v4875_v28 }
  0x83   :  { %4356 = vmatpush3.msra.mxu0 %v5375_v31  ;;  %4363 = vmatprep.mubr.msk.f32.mxu0 %vm4877_vm0, %v4875_v28 }
  0x84   :  { %1488 = vmatmul.mubr.bf16.vlgmr.msra.gmra.mxu1 %v3880_v32  ;;  %4357 = vmatprep.subr.mxu0 %v4875_v28 }
  0x85   :  { %4358 = vmatpush3.msra.mxu0 %v5383_v35  ;;  %4374 = vmatprep.mubr.msk.f32.mxu1 %vm4877_vm0, %v4875_v28 }
  0x86   :  { %4359 = vmatprep.subr.mxu0 %v4875_v28 }
  0x87   :  { %4360 = vmatpush3.msra.mxu0 %v5391_v36 }
  0x88   :  { %4361 = vmatprep.subr.mxu0 %v4875_v28 }
  0x89   :  { %4362 = vmatpush3.msra.mxu0 %v5400_v37 }
  0x8a   :  { %4364 = vmatmul.mubr.f32.vlgmr.msra.gmra.mxu0 %v4875_v28  ;;  %4377 = vmatprep.subr.mxu0 %v4875_v28 }
  0x8b   :  { %4385 = vmatprep.mubr.msk.f32.mxu0 %vm4877_vm0, %v4875_v28 }
  0xc5   :  { %v5415_v32 = vpop.permute.xlu0 %1608 }
  0xe2   :  { %v4070_v38 = vpop.f32.mrf.mxu0 }
  0xe4   :  { %v4071_v39 = vpop.f32.mrf.mxu0  ;;  %v4092_v41 = vpop.f32.mrf.mxu1 }
  0xe5   :  { %v4072_v40 = vadd.f32 %v4071_v39, %v4070_v38 }
  0xe6   :  { %v4073_v42 = vpop.f32.mrf.mxu0  ;;  %v4093_v43 = vpop.f32.mrf.mxu1 }
  0xe7   :  { %v1203_v52 = vadd.f32 %v4072_v40, %v3865_v47  ;;  %v4094_v53 = vadd.f32 %v4093_v43, %v4092_v41 }
  0xe8   :  { %v4074_v44 = vpop.f32.mrf.mxu0  ;;  %v4095_v46 = vpop.f32.mrf.mxu1 }
  0xe9   :  { %v4075_v45 = vadd.f32 %v4074_v44, %v4073_v42  ;;  %v1244_v56 = vadd.f32 %v4094_v53, %v1203_v52 }
  0xea   :  { %v4096_v49 = vpop.f32.mrf.mxu1 }
  0xeb   :  { %v1206_v48 = vadd.f32 %v4075_v45, %v3865_v47  ;;  %v4097_v50 = vadd.f32 %v4096_v49, %v4095_v46 }
  0xed   :  { %v1247_v51 = vadd.f32 %v4097_v50, %v1206_v48 }
 0x102   :  { %v4114_v54 = vpop.f32.mrf.mxu0 }
 0x104   :  { %v4115_v55 = vpop.f32.mrf.mxu0  ;;  %v4136_v58 = vpop.f32.mrf.mxu1 }
 0x105   :  { %v4116_v57 = vadd.f32 %v4115_v55, %v4114_v54 }
 0x106   :  { %v4117_v59 = vpop.f32.mrf.mxu0  ;;  %v4137_v61 = vpop.f32.mrf.mxu1 }
 0x107   :  { %v1285_v60 = vadd.f32 %v4116_v57, %v1244_v56  ;;  %v4138_v5 = vadd.f32 %v4137_v61, %v4136_v58  ;;  %v5429_v57 = vld [vmem:[%s5945_s7 + $0x18] sm:$0xff]  ;;  %v5434_v58 = vld [vmem:[%s5945_s7 + $0x10] sm:$0xff]  ;;  %v5451_v61 = vld [vmem:[%s5945_s7 + $0x8] sm:$0xff] }
 0x108   :  { %v4118_v62 = vpop.f32.mrf.mxu0  ;;  %v4139_v0 = vpop.f32.mrf.mxu1  ;;  %4367 = vmatpush3.msra.mxu1 %v5429_v57 }
 0x109   :  { %v4119_v63 = vadd.f32 %v4118_v62, %v4117_v59  ;;  %v1326_v9 = vadd.f32 %v4138_v5, %v1285_v60  ;;  %v5440_v59 = vld [vmem:[%s5946_s5 + $0x18] sm:$0xff]  ;;  %v5445_v60 = vld [vmem:[%s5946_s5 + $0x10] sm:$0xff]  ;;  %4368 = vmatprep.subr.mxu1 %v4875_v28  ;;  %v5459_v62 = vld [vmem:[%s5946_s5 + $0x8] sm:$0xff] }
 0x10a   :  { %v4140_v2 = vpop.f32.mrf.mxu1  ;;  %4378 = vmatpush3.msra.mxu0 %v5440_v59  ;;  %4369 = vmatpush3.msra.mxu1 %v5434_v58 }
 0x10b   :  { %v1288_v1 = vadd.f32 %v4119_v63, %v1247_v51  ;;  %v4141_v3 = vadd.f32 %v4140_v2, %v4139_v0  ;;  %4379 = vmatprep.subr.mxu0 %v4875_v28  ;;  %4370 = vmatprep.subr.mxu1 %v4875_v28  ;;  %v5465_v63 = vld [vmem:[%s5945_s7] sm:$0xff] }
 0x10c   :  { %4380 = vmatpush3.msra.mxu0 %v5445_v60  ;;  %4371 = vmatpush3.msra.mxu1 %v5451_v61  ;;  %v5475_v0 = vld [vmem:[%s5946_s5] sm:$0xff] }
 0x10d   :  { %v1329_v4 = vadd.f32 %v4141_v3, %v1288_v1  ;;  %4381 = vmatprep.subr.mxu0 %v4875_v28  ;;  %4372 = vmatprep.subr.mxu1 %v4875_v28  ;;  %v4012_v2 = vld [vmem:[%s5947_s8] ss:$0 sm:$0xff] }
 0x10e   :  { %4382 = vmatpush3.msra.mxu0 %v5459_v62  ;;  %4373 = vmatpush3.msra.mxu1 %v5465_v63 }
 0x10f   :  { %4383 = vmatprep.subr.mxu0 %v4875_v28  ;;  %4375 = vmatmul.mubr.f32.vlgmr.msra.gmra.mxu1 %v4875_v28 }
 0x110   :  { %4388 = vmatprep.subr.mxu1 %v4875_v28  ;;  %4384 = vmatpush3.msra.mxu0 %v5475_v0 }
 0x111   :  { %4389 = vmatpush3.msra.mxu1 %v5375_v31  ;;  %4396 = vmatprep.mubr.msk.f32.mxu1 %vm4877_vm0, %v4875_v28 }
 0x112   :  { %4390 = vmatprep.subr.mxu1 %v4875_v28  ;;  %4399 = vmatprep.subr.mxu0 %v4875_v28 }
 0x113   :  { %4391 = vmatpush3.msra.mxu1 %v5383_v35 }
 0x114   :  { %4392 = vmatprep.subr.mxu1 %v4875_v28 }
 0x115   :  { %4393 = vmatpush3.msra.mxu1 %v5391_v36 }
 0x116   :  { %4394 = vmatprep.subr.mxu1 %v4875_v28 }
 0x117   :  { %4395 = vmatpush3.msra.mxu1 %v5400_v37 }
 0x118   :  { %4410 = vmatprep.subr.mxu1 %v4875_v28 }
 0x122   :  { %v4158_v6 = vpop.f32.mrf.mxu0 }
 0x124   :  { %v4159_v7 = vpop.f32.mrf.mxu0  ;;  %v4180_v8 = vpop.f32.mrf.mxu1 }
 0x125   :  { %v4160_v10 = vadd.f32 %v4159_v7, %v4158_v6 }
 0x126   :  { %v4161_v11 = vpop.f32.mrf.mxu0  ;;  %v4181_v12 = vpop.f32.mrf.mxu1 }
 0x127   :  { %v1367_v13 = vadd.f32 %v4160_v10, %v1326_v9  ;;  %v4182_v21 = vadd.f32 %v4181_v12, %v4180_v8 }
 0x128   :  { %v4162_v14 = vpop.f32.mrf.mxu0  ;;  %v4183_v15 = vpop.f32.mrf.mxu1 }
 0x129   :  { %v4163_v16 = vadd.f32 %v4162_v14, %v4161_v11  ;;  %v1408_v25 = vadd.f32 %v4182_v21, %v1367_v13  ;;  %v5531_v13 = vld [vmem:[%s5948_s6] ss:$0 sm:$0xff] }
 0x12a   :  { %v4184_v17 = vpop.f32.mrf.mxu1 }
 0x12b   :  { %v1370_v18 = vadd.f32 %v4163_v16, %v1329_v4  ;;  %v4185_v19 = vadd.f32 %v4184_v17, %v4183_v15 }
 0x12d   :  { %v1411_v20 = vadd.f32 %v4185_v19, %v1370_v18 }
 0x142   :  { %v4202_v22 = vpop.f32.mrf.mxu0 }
 0x144   :  { %v4203_v23 = vpop.f32.mrf.mxu0  ;;  %v4224_v24 = vpop.f32.mrf.mxu1 }
 0x145   :  { %v4204_v26 = vadd.f32 %v4203_v23, %v4202_v22 }
 0x146   :  { %v4205_v27 = vpop.f32.mrf.mxu0  ;;  %v4225_v29 = vpop.f32.mrf.mxu1 }
 0x147   :  { %v1449_v30 = vadd.f32 %v4204_v26, %v1408_v25  ;;  %v4226_v46 = vadd.f32 %v4225_v29, %v4224_v24 }
 0x148   :  { %v4206_v33 = vpop.f32.mrf.mxu0  ;;  %v4227_v34 = vpop.f32.mrf.mxu1 }
 0x149   :  { %v4207_v38 = vadd.f32 %v4206_v33, %v4205_v27  ;;  %v5421_v47 = vadd.f32 %v4226_v46, %v1449_v30 }
 0x14a   :  { %v4228_v39 = vpop.f32.mrf.mxu1  ;;  %v1597_v40 = vpop.f32.mrf.mxu0 }
 0x14b   :  { %v1452_v41 = vadd.f32 %v4207_v38, %v1411_v20  ;;  %v4229_v42 = vadd.f32 %v4228_v39, %v4227_v34  ;;  %v1611_v43 = vadd.f32 %v5415_v32, %v1597_v40  ;;  %v1601_v48 = vadd.f32 %v1597_v40, %v5421_v47 }
 0x14c   :  { %v4365_v44 = vpop.f32.mrf.mxu0 }
 0x14d   :  { %v5418_v45 = vadd.f32 %v4229_v42, %v1452_v41  ;;  %1613 = vrot.lane.b32.xlu0 %v1611_v43, %s4876_s0  ;;  %v4013_v49 = vmul.f32 -1.442695, %v1601_v48 }
 0x14f   :  { %4762 = vpow2.f32 %v4013_v49 }
 0x15c   :  { %v4763_v50 = vpop.eup %4762 }
 0x15d   :  { %v1605_v51 = vadd.f32 1.0, %v4763_v50 }
 0x15f   :  { %4764 = vrcp.f32 %v1605_v51 }
 0x16c   :  { %v4765_v52 = vpop.eup %4764 }
 0x16d   :  { %v1623_v3 = vsub.f32 1.0, %v4765_v52  ;;  %v1629_v5 = vmul.f32 0.0, %v4765_v52 }
 0x1bf   :  { %v1614_v53 = vpop.permute.xlu0 %1613 }
 0x1c0   :  { %v1616_v54 = vmul.f32 %v4765_v52, %v1614_v53 }
 0x1c2   :  { %1618 = vrot.lane.b32.xlu1 %v1616_v54, %s4876_s0 }
 0x1cf   :  { %v1697_v9 = vpop.f32.mrf.mxu1 }
 0x1d1   :  { %v4376_v11 = vpop.f32.mrf.mxu1 }
 0x234   :  { %v1619_v55 = vpop.permute.xlu1 %1618 }
 0x235   :  { %v1621_v56 = vadd.f32 %v1619_v55, %v5421_v47 }
 0x237   :  { %4766 = vtanh.f32 %v1621_v56 }
 0x244   :  { %v4767_v1 = vpop.eup %4766 }
 0x245   :  { %1625 = vrot.lane.b32.xlu1 %v4767_v1, %s4878_s25 }
 0x249   :  { %1783 = vrot.lane.b32.xlu1 %v4012_v2, %s4876_s0 }
 0x2b7   :  { %v1626_v4 = vpop.permute.xlu1 %1625 }
 0x2b8   :  { %v1628_v6 = vmul.f32 %v1626_v4, %v1623_v3 }
 0x2ba   :  { %v5498_v7 = vadd.f32 %v1629_v5, %v1628_v6 }
 0x2bb   :  { %v5502_v8 = vpop.permute.xlu1 %1783 }
 0x2bc   :  { %1702 = vrot.lane.b32.xlu0 %v5498_v7, %s4878_s25  ;;  %v1786_v10 = vadd.f32 %v5502_v8, %v1697_v9  ;;  %v1905_v55 = vrot.slane %v5498_v7, 6 }
 0x2c0   :  { %1788 = vrot.lane.b32.xlu0 %v1786_v10, %s4876_s0 }
 0x32e   :  { %v1703_v12 = vpop.permute.xlu0 %1702 }
 0x32f   :  { %4386 = vmatmul.mubr.msk.f32.vlgmr.msra.gmra.mxu0 %vm1527_vm1, %v1703_v12  ;;  %4397 = vmatmul.mubr.msk.f32.vlgmr.msra.gmra.mxu1 %vm1527_vm1, %v1703_v12 }
 0x330   :  { %4400 = vmatpush3.msra.mxu0 %v5429_v57  ;;  %4407 = vmatprep.mubr.msk.f32.mxu0 %vm4877_vm0, %v4875_v28 }
 0x331   :  { %4401 = vmatprep.subr.mxu0 %v4875_v28  ;;  %4411 = vmatpush3.msra.mxu1 %v5440_v59 }
 0x332   :  { %4402 = vmatpush3.msra.mxu0 %v5434_v58  ;;  %4412 = vmatprep.subr.mxu1 %v4875_v28  ;;  %v1789_v25 = vpop.permute.xlu0 %1788 }
 0x333   :  { %4403 = vmatprep.subr.mxu0 %v4875_v28  ;;  %4413 = vmatpush3.msra.mxu1 %v5445_v60 }
 0x334   :  { %4404 = vmatpush3.msra.mxu0 %v5451_v61  ;;  %4414 = vmatprep.subr.mxu1 %v4875_v28 }
 0x335   :  { %4405 = vmatprep.subr.mxu0 %v4875_v28  ;;  %4415 = vmatpush3.msra.mxu1 %v5459_v62 }
 0x336   :  { %4406 = vmatpush3.msra.mxu0 %v5465_v63  ;;  %4416 = vmatprep.subr.mxu1 %v4875_v28 }
 0x337   :  { %4421 = vmatprep.subr.mxu0 %v4875_v28  ;;  %4417 = vmatpush3.msra.mxu1 %v5475_v0 }
 0x338   :  { %4418 = vmatprep.mubr.msk.f32.mxu1 %vm4877_vm0, %v4875_v28  ;;  %4432 = vmatprep.subr.mxu1 %v4875_v28 }
 0x3ef   :  { %v1772_v14 = vpop.f32.mrf.mxu0  ;;  %v1872_v15 = vpop.f32.mrf.mxu1 }
 0x3f0   :  { %v1773_v16 = vadd.f32 %v5531_v13, %v1772_v14  ;;  %v1886_v17 = vadd.f32 %v1872_v15, %v5415_v32  ;;  %v1877_v29 = vrot.slane %v1872_v15, 6 }
 0x3f1   :  { %v4387_v18 = vpop.f32.mrf.mxu0  ;;  %v4398_v19 = vpop.f32.mrf.mxu1 }
 0x3f2   :  { %v1776_v20 = vadd.f32 %v1773_v16, %v1697_v9  ;;  %v1888_v21 = vrot.slane %v1886_v17, 6  ;;  %v1879_v30 = vadd.f32 %v1877_v29, %v5421_v47 }
 0x3f4   :  { %v4015_v22 = vmul.f32 -1.442695, %v1776_v20  ;;  %1889 = vrot.lane.b32.xlu1 %v1888_v21, %s4876_s0  ;;  %v4017_v33 = vmul.f32 -1.442695, %v1879_v30 }
 0x3f6   :  { %4768 = vpow2.f32 %v4015_v22 }
 0x403   :  { %v4769_v23 = vpop.eup %4768 }
 0x404   :  { %v1780_v24 = vadd.f32 1.0, %v4769_v23 }
 0x406   :  { %4770 = vrcp.f32 %v1780_v24 }
 0x407   :  { %4772 = vpow2.f32 %v4017_v33 }
 0x413   :  { %v4771_v26 = vpop.eup %4770 }
 0x414   :  { %v1791_v27 = vmul.f32 %v4771_v26, %v1789_v25  ;;  %v4773_v34 = vpop.eup %4772  ;;  %v1798_v50 = vsub.f32 1.0, %v4771_v26  ;;  %v1804_v52 = vmul.f32 0.0, %v4771_v26 }
 0x415   :  { %v1883_v38 = vadd.f32 1.0, %v4773_v34 }
 0x416   :  { %1793 = vrot.lane.b32.xlu0 %v1791_v27, %s4876_s0 }
 0x417   :  { %4774 = vrcp.f32 %v1883_v38 }
 0x424   :  { %v4775_v39 = vpop.eup %4774 }
 0x425   :  { %v1899_v56 = vsub.f32 1.0, %v4775_v39  ;;  %v1907_v2 = vmul.f32 %v4775_v39, %v1905_v55 }
 0x466   :  { %v1890_v40 = vpop.permute.xlu1 %1889 }
 0x467   :  { %v1892_v41 = vmul.f32 %v4775_v39, %v1890_v40 }
 0x469   :  { %1894 = vrot.lane.b32.xlu1 %v1892_v41, %s4876_s0 }
 0x488   :  { %v1794_v42 = vpop.permute.xlu0 %1793 }
 0x489   :  { %v1796_v43 = vadd.f32 %v1794_v42, %v1773_v16 }
 0x48b   :  { %4776 = vtanh.f32 %v1796_v43 }
 0x498   :  { %v4777_v44 = vpop.eup %4776 }
 0x499   :  { %1800 = vrot.lane.b32.xlu0 %v4777_v44, %s4878_s25 }
 0x4db   :  { %v1895_v46 = vpop.permute.xlu1 %1894 }
 0x4dc   :  { %v1897_v48 = vadd.f32 %v1895_v46, %v5421_v47 }
 0x4de   :  { %4778 = vtanh.f32 %v1897_v48 }
 0x4eb   :  { %v4779_v49 = vpop.eup %4778 }
 0x4ec   :  { %1901 = vrot.lane.b32.xlu1 %v4779_v49, %s4878_s25 }
 0x50b   :  { %v1801_v51 = vpop.permute.xlu0 %1800 }
 0x50c   :  { %v1803_v53 = vmul.f32 %v1801_v51, %v1798_v50 }
 0x50e   :  { %v5542_v54 = vadd.f32 %v1804_v52, %v1803_v53 }
 0x510   :  { %1910 = vrot.lane.b32.xlu0 %v5542_v54, %s4878_s25 }
 0x55e   :  { %v1902_v1 = vpop.permute.xlu1 %1901 }
 0x55f   :  { %v1904_v3 = vmul.f32 %v1902_v1, %v1899_v56 }
 0x561   :  { %v5547_v4 = vadd.f32 %v1907_v2, %v1904_v3 }
 0x563   :  { %v1985_v5 = vrot.slane %v5547_v4, 2  ;;  %v2186_v55 = vrot.slane %v5547_v4, 6 }
 0x565   :  { %1986 = vrot.lane.b32.xlu1 %v1985_v5, %s4878_s25 }
 0x582   :  { %v1911_v6 = vpop.permute.xlu0 %1910 }
 0x583   :  { %4408 = vmatmul.mubr.msk.f32.vlgmr.msra.gmra.mxu0 %vm1527_vm1, %v1911_v6 }
 0x584   :  { %4422 = vmatpush3.msra.mxu0 %v5375_v31  ;;  %4429 = vmatprep.mubr.msk.f32.mxu0 %vm4877_vm0, %v4875_v28 }
 0x585   :  { %4423 = vmatprep.subr.mxu0 %v4875_v28 }
 0x586   :  { %4424 = vmatpush3.msra.mxu0 %v5383_v35 }
 0x587   :  { %4425 = vmatprep.subr.mxu0 %v4875_v28 }
 0x588   :  { %4426 = vmatpush3.msra.mxu0 %v5391_v36 }
 0x589   :  { %4427 = vmatprep.subr.mxu0 %v4875_v28 }
 0x58a   :  { %4428 = vmatpush3.msra.mxu0 %v5400_v37 }
 0x58b   :  { %4443 = vmatprep.subr.mxu0 %v4875_v28 }
 0x5d7   :  { %v1987_v7 = vpop.permute.xlu1 %1986 }
 0x5d8   :  { %4419 = vmatmul.mubr.msk.f32.vlgmr.msra.gmra.mxu1 %vm1527_vm1, %v1987_v7  ;;  %4430 = vmatmul.mubr.msk.f32.vlgmr.msra.gmra.mxu0 %vm1527_vm1, %v1987_v7 }
 0x5d9   :  { %4433 = vmatpush3.msra.mxu1 %v5429_v57  ;;  %4440 = vmatprep.mubr.msk.f32.mxu1 %vm4877_vm0, %v4875_v28 }
 0x5da   :  { %4434 = vmatprep.subr.mxu1 %v4875_v28  ;;  %4444 = vmatpush3.msra.mxu0 %v5440_v59 }
 0x5db   :  { %4435 = vmatpush3.msra.mxu1 %v5434_v58  ;;  %4445 = vmatprep.subr.mxu0 %v4875_v28 }
 0x5dc   :  { %4436 = vmatprep.subr.mxu1 %v4875_v28  ;;  %4446 = vmatpush3.msra.mxu0 %v5445_v60 }
 0x5dd   :  { %4437 = vmatpush3.msra.mxu1 %v5451_v61  ;;  %4447 = vmatprep.subr.mxu0 %v4875_v28 }
 0x5de   :  { %4438 = vmatprep.subr.mxu1 %v4875_v28  ;;  %4448 = vmatpush3.msra.mxu0 %v5459_v62 }
 0x5df   :  { %4439 = vmatpush3.msra.mxu1 %v5465_v63  ;;  %4449 = vmatprep.subr.mxu0 %v4875_v28 }
 0x5e0   :  { %4454 = vmatprep.subr.mxu1 %v4875_v28  ;;  %4450 = vmatpush3.msra.mxu0 %v5475_v0 }
 0x5e1   :  { %4451 = vmatprep.mubr.msk.f32.mxu0 %vm4877_vm0, %v4875_v28  ;;  %4465 = vmatprep.subr.mxu0 %v4875_v28 }
 0x643   :  { %v1980_v9 = vpop.f32.mrf.mxu0 }
 0x644   :  { %v2067_v10 = vadd.f32 %v1980_v9, %v5502_v8 }
 0x645   :  { %v4409_v11 = vpop.f32.mrf.mxu0 }
 0x646   :  { %2069 = vrot.lane.b32.xlu0 %v2067_v10, %s4876_s0 }
 0x698   :  { %v2056_v12 = vpop.f32.mrf.mxu1  ;;  %v2153_v14 = vpop.f32.mrf.mxu0 }
 0x699   :  { %v2057_v15 = vadd.f32 %v5531_v13, %v2056_v12  ;;  %v2167_v16 = vadd.f32 %v2153_v14, %v5415_v32  ;;  %v2158_v27 = vrot.slane %v2153_v14, 4 }
 0x69a   :  { %v4420_v17 = vpop.f32.mrf.mxu1  ;;  %v4431_v18 = vpop.f32.mrf.mxu0 }
 0x69b   :  { %v2060_v19 = vadd.f32 %v2057_v15, %v1980_v9  ;;  %v2169_v20 = vrot.slane %v2167_v16, 4  ;;  %v2160_v29 = vadd.f32 %v2158_v27, %v5421_v47 }
 0x69d   :  { %v4020_v21 = vmul.f32 -1.442695, %v2060_v19  ;;  %2170 = vrot.lane.b32.xlu1 %v2169_v20, %s4876_s0  ;;  %v4022_v30 = vmul.f32 -1.442695, %v2160_v29 }
 0x69f   :  { %4780 = vpow2.f32 %v4020_v21 }
 0x6ac   :  { %v4781_v22 = vpop.eup %4780 }
 0x6ad   :  { %v2064_v23 = vadd.f32 1.0, %v4781_v22 }
 0x6af   :  { %4782 = vrcp.f32 %v2064_v23 }
 0x6b0   :  { %4784 = vpow2.f32 %v4022_v30 }
 0x6b8   :  { %v2070_v25 = vpop.permute.xlu0 %2069 }
 0x6bc   :  { %v4783_v24 = vpop.eup %4782 }
 0x6bd   :  { %v2072_v26 = vmul.f32 %v4783_v24, %v2070_v25  ;;  %v4785_v33 = vpop.eup %4784  ;;  %v2079_v49 = vsub.f32 1.0, %v4783_v24  ;;  %v2085_v51 = vmul.f32 %v4783_v24, %v5542_v54 }
 0x6be   :  { %v2164_v34 = vadd.f32 1.0, %v4785_v33 }
 0x6bf   :  { %2074 = vrot.lane.b32.xlu0 %v2072_v26, %s4876_s0 }
 0x6c0   :  { %4786 = vrcp.f32 %v2164_v34 }
 0x6cd   :  { %v4787_v38 = vpop.eup %4786 }
 0x6ce   :  { %v2180_v56 = vsub.f32 1.0, %v4787_v38  ;;  %v2188_v2 = vmul.f32 %v4787_v38, %v2186_v55 }
 0x70f   :  { %v2171_v39 = vpop.permute.xlu1 %2170 }
 0x710   :  { %v2173_v40 = vmul.f32 %v4787_v38, %v2171_v39 }
 0x712   :  { %2175 = vrot.lane.b32.xlu1 %v2173_v40, %s4876_s0 }
 0x731   :  { %v2075_v41 = vpop.permute.xlu0 %2074 }
 0x732   :  { %v2077_v42 = vadd.f32 %v2075_v41, %v2057_v15 }
 0x734   :  { %4788 = vtanh.f32 %v2077_v42 }
 0x741   :  { %v4789_v43 = vpop.eup %4788 }
 0x742   :  { %2081 = vrot.lane.b32.xlu0 %v4789_v43, %s4878_s25 }
 0x784   :  { %v2176_v44 = vpop.permute.xlu1 %2175 }
 0x785   :  { %v2178_v46 = vadd.f32 %v2176_v44, %v5421_v47 }
 0x787   :  { %4790 = vtanh.f32 %v2178_v46 }
 0x794   :  { %v4791_v48 = vpop.eup %4790 }
 0x795   :  { %2182 = vrot.lane.b32.xlu1 %v4791_v48, %s4878_s25 }
 0x7b4   :  { %v2082_v50 = vpop.permute.xlu0 %2081 }
 0x7b5   :  { %v2084_v52 = vmul.f32 %v2082_v50, %v2079_v49 }
 0x7b7   :  { %v5596_v53 = vadd.f32 %v2085_v51, %v2084_v52 }
 0x7b9   :  { %2191 = vrot.lane.b32.xlu0 %v5596_v53, %s4878_s25 }
 0x807   :  { %v2183_v1 = vpop.permute.xlu1 %2182 }
 0x808   :  { %v2185_v3 = vmul.f32 %v2183_v1, %v2180_v56 }
 0x80a   :  { %v5601_v5 = vadd.f32 %v2188_v2, %v2185_v3 }
 0x80c   :  { %v2266_v6 = vrot.slane %v5601_v5, 4  ;;  %v2467_v55 = vrot.slane %v5601_v5, 6 }
 0x80e   :  { %2267 = vrot.lane.b32.xlu1 %v2266_v6, %s4878_s25 }
 0x82b   :  { %v2192_v7 = vpop.permute.xlu0 %2191 }
 0x82c   :  { %4441 = vmatmul.mubr.msk.f32.vlgmr.msra.gmra.mxu1 %vm1527_vm1, %v2192_v7 }
 0x82d   :  { %4455 = vmatpush3.msra.mxu1 %v5375_v31  ;;  %4462 = vmatprep.mubr.msk.f32.mxu1 %vm4877_vm0, %v4875_v28 }
 0x82e   :  { %4456 = vmatprep.subr.mxu1 %v4875_v28 }
 0x82f   :  { %4457 = vmatpush3.msra.mxu1 %v5383_v35 }
 0x830   :  { %4458 = vmatprep.subr.mxu1 %v4875_v28 }
 0x831   :  { %4459 = vmatpush3.msra.mxu1 %v5391_v36 }
 0x832   :  { %4460 = vmatprep.subr.mxu1 %v4875_v28 }
 0x833   :  { %4461 = vmatpush3.msra.mxu1 %v5400_v37 }
 0x834   :  { %4476 = vmatprep.subr.mxu1 %v4875_v28 }
 0x880   :  { %v2268_v54 = vpop.permute.xlu1 %2267 }
 0x881   :  { %4452 = vmatmul.mubr.msk.f32.vlgmr.msra.gmra.mxu0 %vm1527_vm1, %v2268_v54  ;;  %4463 = vmatmul.mubr.msk.f32.vlgmr.msra.gmra.mxu1 %vm1527_vm1, %v2268_v54 }
 0x882   :  { %4466 = vmatpush3.msra.mxu0 %v5429_v57  ;;  %4473 = vmatprep.mubr.msk.f32.mxu0 %vm4877_vm0, %v4875_v28 }
 0x883   :  { %4467 = vmatprep.subr.mxu0 %v4875_v28  ;;  %4477 = vmatpush3.msra.mxu1 %v5440_v59 }
 0x884   :  { %4468 = vmatpush3.msra.mxu0 %v5434_v58  ;;  %4478 = vmatprep.subr.mxu1 %v4875_v28 }
 0x885   :  { %4469 = vmatprep.subr.mxu0 %v4875_v28  ;;  %4479 = vmatpush3.msra.mxu1 %v5445_v60 }
 0x886   :  { %4470 = vmatpush3.msra.mxu0 %v5451_v61  ;;  %4480 = vmatprep.subr.mxu1 %v4875_v28 }
 0x887   :  { %4471 = vmatprep.subr.mxu0 %v4875_v28  ;;  %4481 = vmatpush3.msra.mxu1 %v5459_v62 }
 0x888   :  { %4472 = vmatpush3.msra.mxu0 %v5465_v63  ;;  %4482 = vmatprep.subr.mxu1 %v4875_v28 }
 0x889   :  { %4487 = vmatprep.subr.mxu0 %v4875_v28  ;;  %4483 = vmatpush3.msra.mxu1 %v5475_v0 }
 0x88a   :  { %4484 = vmatprep.mubr.msk.f32.mxu1 %vm4877_vm0, %v4875_v28  ;;  %4498 = vmatprep.subr.mxu1 %v4875_v28 }
 0x8ec   :  { %v2261_v4 = vpop.f32.mrf.mxu1 }
 0x8ed   :  { %v2348_v9 = vadd.f32 %v2261_v4, %v5502_v8 }
 0x8ee   :  { %v4442_v10 = vpop.f32.mrf.mxu1 }
 0x8ef   :  { %2350 = vrot.lane.b32.xlu0 %v2348_v9, %s4876_s0 }
 0x941   :  { %v2337_v11 = vpop.f32.mrf.mxu0  ;;  %v2434_v12 = vpop.f32.mrf.mxu1 }
 0x942   :  { %v2338_v14 = vadd.f32 %v5531_v13, %v2337_v11  ;;  %v2448_v15 = vadd.f32 %v2434_v12, %v5415_v32  ;;  %v2439_v26 = vrot.slane %v2434_v12, 2 }
 0x943   :  { %v4453_v16 = vpop.f32.mrf.mxu0  ;;  %v4464_v17 = vpop.f32.mrf.mxu1 }
 0x944   :  { %v2341_v18 = vadd.f32 %v2338_v14, %v2261_v4  ;;  %v2450_v19 = vrot.slane %v2448_v15, 2  ;;  %v2441_v27 = vadd.f32 %v2439_v26, %v5421_v47 }
 0x946   :  { %v4025_v20 = vmul.f32 -1.442695, %v2341_v18  ;;  %2451 = vrot.lane.b32.xlu1 %v2450_v19, %s4876_s0  ;;  %v4027_v29 = vmul.f32 -1.442695, %v2441_v27 }
 0x948   :  { %4792 = vpow2.f32 %v4025_v20 }
 0x955   :  { %v4793_v21 = vpop.eup %4792 }
 0x956   :  { %v2345_v22 = vadd.f32 1.0, %v4793_v21 }
 0x958   :  { %4794 = vrcp.f32 %v2345_v22 }
 0x959   :  { %4796 = vpow2.f32 %v4027_v29 }
 0x961   :  { %v2351_v24 = vpop.permute.xlu0 %2350 }
 0x965   :  { %v4795_v23 = vpop.eup %4794 }
 0x966   :  { %v2353_v25 = vmul.f32 %v4795_v23, %v2351_v24  ;;  %v4797_v30 = vpop.eup %4796  ;;  %v2360_v48 = vsub.f32 1.0, %v4795_v23  ;;  %v2366_v50 = vmul.f32 %v4795_v23, %v5596_v53 }
 0x967   :  { %v2445_v33 = vadd.f32 1.0, %v4797_v30 }
 0x968   :  { %2355 = vrot.lane.b32.xlu0 %v2353_v25, %s4876_s0 }
 0x969   :  { %4798 = vrcp.f32 %v2445_v33 }
 0x976   :  { %v4799_v34 = vpop.eup %4798 }
 0x977   :  { %v2461_v56 = vsub.f32 1.0, %v4799_v34  ;;  %v2469_v2 = vmul.f32 %v4799_v34, %v2467_v55 }
 0x9b8   :  { %v2452_v38 = vpop.permute.xlu1 %2451 }
 0x9b9   :  { %v2454_v39 = vmul.f32 %v4799_v34, %v2452_v38 }
 0x9bb   :  { %2456 = vrot.lane.b32.xlu1 %v2454_v39, %s4876_s0 }
 0x9da   :  { %v2356_v40 = vpop.permute.xlu0 %2355 }
 0x9db   :  { %v2358_v41 = vadd.f32 %v2356_v40, %v2338_v14 }
 0x9dd   :  { %4800 = vtanh.f32 %v2358_v41 }
 0x9ea   :  { %v4801_v42 = vpop.eup %4800 }
 0x9eb   :  { %2362 = vrot.lane.b32.xlu0 %v4801_v42, %s4878_s25 }
 0xa2d   :  { %v2457_v43 = vpop.permute.xlu1 %2456 }
 0xa2e   :  { %v2459_v44 = vadd.f32 %v2457_v43, %v5421_v47 }
 0xa30   :  { %4802 = vtanh.f32 %v2459_v44 }
 0xa3d   :  { %v4803_v46 = vpop.eup %4802 }
 0xa3e   :  { %2463 = vrot.lane.b32.xlu1 %v4803_v46, %s4878_s25 }
 0xa5d   :  { %v2363_v49 = vpop.permute.xlu0 %2362 }
 0xa5e   :  { %v2365_v51 = vmul.f32 %v2363_v49, %v2360_v48 }
 0xa60   :  { %v5650_v52 = vadd.f32 %v2366_v50, %v2365_v51 }
 0xa62   :  { %2472 = vrot.lane.b32.xlu0 %v5650_v52, %s4878_s25 }
 0xab0   :  { %v2464_v1 = vpop.permute.xlu1 %2463 }
 0xab1   :  { %v2466_v47 = vmul.f32 %v2464_v1, %v2461_v56 }
 0xab3   :  { %v5655_v3 = vadd.f32 %v2469_v2, %v2466_v47 }
 0xab5   :  { %v2547_v6 = vrot.slane %v5655_v3, 6 }
 0xab7   :  { %2548 = vrot.lane.b32.xlu1 %v2547_v6, %s4878_s25 }
 0xad4   :  { %v2473_v53 = vpop.permute.xlu0 %2472 }
 0xad5   :  { %4474 = vmatmul.mubr.msk.f32.vlgmr.msra.gmra.mxu0 %vm1527_vm1, %v2473_v53 }
 0xad6   :  { %4488 = vmatpush3.msra.mxu0 %v5375_v31  ;;  %4495 = vmatprep.mubr.msk.f32.mxu0 %vm4877_vm0, %v4875_v28 }
 0xad7   :  { %4489 = vmatprep.subr.mxu0 %v4875_v28 }
 0xad8   :  { %4490 = vmatpush3.msra.mxu0 %v5383_v35 }
 0xad9   :  { %4491 = vmatprep.subr.mxu0 %v4875_v28 }
 0xada   :  { %4492 = vmatpush3.msra.mxu0 %v5391_v36 }
 0xadb   :  { %4493 = vmatprep.subr.mxu0 %v4875_v28 }
 0xadc   :  { %4494 = vmatpush3.msra.mxu0 %v5400_v37 }
 0xadd   :  { %4509 = vmatprep.subr.mxu0 %v4875_v28 }
 0xb29   :  { %v2549_v5 = vpop.permute.xlu1 %2548 }
 0xb2a   :  { %4485 = vmatmul.mubr.msk.f32.vlgmr.msra.gmra.mxu1 %vm1527_vm1, %v2549_v5  ;;  %4496 = vmatmul.mubr.msk.f32.vlgmr.msra.gmra.mxu0 %vm1527_vm1, %v2549_v5 }
 0xb2b   :  { %4499 = vmatpush3.msra.mxu1 %v5429_v57  ;;  %4506 = vmatprep.mubr.msk.f32.mxu1 %vm4877_vm0, %v4875_v28 }
 0xb2c   :  { %4500 = vmatprep.subr.mxu1 %v4875_v28  ;;  %4510 = vmatpush3.msra.mxu0 %v5440_v59 }
 0xb2d   :  { %4501 = vmatpush3.msra.mxu1 %v5434_v58  ;;  %4511 = vmatprep.subr.mxu0 %v4875_v28 }
 0xb2e   :  { %4502 = vmatprep.subr.mxu1 %v4875_v28  ;;  %4512 = vmatpush3.msra.mxu0 %v5445_v60 }
 0xb2f   :  { %4503 = vmatpush3.msra.mxu1 %v5451_v61  ;;  %4513 = vmatprep.subr.mxu0 %v4875_v28 }
 0xb30   :  { %4504 = vmatprep.subr.mxu1 %v4875_v28  ;;  %4514 = vmatpush3.msra.mxu0 %v5459_v62 }
 0xb31   :  { %4505 = vmatpush3.msra.mxu1 %v5465_v63  ;;  %4515 = vmatprep.subr.mxu0 %v4875_v28 }
 0xb32   :  { %4520 = vmatprep.subr.mxu1 %v4875_v28  ;;  %4516 = vmatpush3.msra.mxu0 %v5475_v0 }
 0xb33   :  { %4517 = vmatprep.mubr.msk.f32.mxu0 %vm4877_vm0, %v4875_v28  ;;  %4531 = vmatprep.subr.mxu0 %v4875_v28 }
 0xb95   :  { %v2542_v7 = vpop.f32.mrf.mxu0 }
 0xb96   :  { %v2629_v54 = vadd.f32 %v2542_v7, %v5502_v8 }
 0xb97   :  { %v4475_v4 = vpop.f32.mrf.mxu0 }
 0xb98   :  { %2631 = vrot.lane.b32.xlu0 %v2629_v54, %s4876_s0 }
 0xbea   :  { %v2618_v9 = vpop.f32.mrf.mxu1  ;;  %v2715_v10 = vpop.f32.mrf.mxu0 }
 0xbeb   :  { %v2619_v11 = vadd.f32 %v5531_v13, %v2618_v9  ;;  %v2726_v12 = vadd.f32 %v2715_v10, %v5415_v32  ;;  %v2719_v23 = vadd.f32 %v2715_v10, %v5418_v45 }
 0xbec   :  { %v4486_v14 = vpop.f32.mrf.mxu1  ;;  %v4497_v15 = vpop.f32.mrf.mxu0 }
 0xbed   :  { %v2622_v16 = vadd.f32 %v2619_v11, %v2542_v7  ;;  %2728 = vrot.lane.b32.xlu1 %v2726_v12, %s4876_s0  ;;  %v4032_v24 = vmul.f32 -1.442695, %v2719_v23 }
 0xbef   :  { %v4030_v17 = vmul.f32 -1.442695, %v2622_v16 }
 0xbf1   :  { %4804 = vpow2.f32 %v4030_v17 }
 0xbfe   :  { %v4805_v18 = vpop.eup %4804 }
 0xbff   :  { %v2626_v19 = vadd.f32 1.0, %v4805_v18 }
 0xc01   :  { %4806 = vrcp.f32 %v2626_v19 }
 0xc02   :  { %4808 = vpow2.f32 %v4032_v24 }
 0xc0a   :  { %v2632_v21 = vpop.permute.xlu0 %2631 }
 0xc0e   :  { %v4807_v20 = vpop.eup %4806 }
 0xc0f   :  { %v2634_v22 = vmul.f32 %v4807_v20, %v2632_v21  ;;  %v4809_v25 = vpop.eup %4808  ;;  %v2641_v42 = vsub.f32 1.0, %v4807_v20  ;;  %v2647_v44 = vmul.f32 %v4807_v20, %v5650_v52 }
 0xc10   :  { %v2723_v26 = vadd.f32 1.0, %v4809_v25 }
 0xc11   :  { %2636 = vrot.lane.b32.xlu0 %v2634_v22, %s4876_s0 }
 0xc12   :  { %4810 = vrcp.f32 %v2723_v26 }
 0xc1f   :  { %v4811_v27 = vpop.eup %4810 }
 0xc20   :  { %v2738_v49 = vsub.f32 1.0, %v4811_v27  ;;  %v2745_v51 = vmul.f32 %v4811_v27, %v2547_v6 }
 0xc5f   :  { %v2729_v29 = vpop.permute.xlu1 %2728 }
 0xc60   :  { %v2731_v30 = vmul.f32 %v4811_v27, %v2729_v29 }
 0xc62   :  { %2733 = vrot.lane.b32.xlu1 %v2731_v30, %s4876_s0 }
 0xc83   :  { %v2637_v33 = vpop.permute.xlu0 %2636 }
 0xc84   :  { %v2639_v34 = vadd.f32 %v2637_v33, %v2619_v11 }
 0xc86   :  { %4812 = vtanh.f32 %v2639_v34 }
 0xc93   :  { %v4813_v38 = vpop.eup %4812 }
 0xc94   :  { %2643 = vrot.lane.b32.xlu0 %v4813_v38, %s4878_s25 }
 0xcd4   :  { %v2734_v39 = vpop.permute.xlu1 %2733 }
 0xcd5   :  { %v2736_v40 = vadd.f32 %v2734_v39, %v5418_v45 }
 0xcd7   :  { %4814 = vtanh.f32 %v2736_v40 }
 0xce4   :  { %v4815_v41 = vpop.eup %4814 }
 0xce5   :  { %2740 = vrot.lane.b32.xlu1 %v4815_v41, %s4878_s25 }
 0xd06   :  { %v2644_v43 = vpop.permute.xlu0 %2643 }
 0xd07   :  { %v2646_v46 = vmul.f32 %v2644_v43, %v2641_v42 }
 0xd09   :  { %v5706_v48 = vadd.f32 %v2647_v44, %v2646_v46 }
 0xd0b   :  { %2748 = vrot.lane.b32.xlu0 %v5706_v48, %s4878_s25 }
 0xd57   :  { %v2741_v50 = vpop.permute.xlu1 %2740 }
 0xd58   :  { %v2743_v55 = vmul.f32 %v2741_v50, %v2738_v49  ;;  %v5783_v50 = vld [vmem:[%s5942_s3 + $0x10] sm:$0xff] }
 0xd5a   :  { %v5712_v56 = vadd.f32 %v2745_v51, %v2743_v55  ;;  %v5790_v51 = vld [vmem:[%s5942_s3 + $0x8] sm:$0xff]  ;;  %v5797_v55 = vld [vmem:[%s5942_s3] sm:$0xff] }
 0xd5c   :  { %2823 = vrot.lane.b32.xlu1 %v5712_v56, %s4878_s25  ;;  %v3023_v39 = vrot.slane %v5712_v56, 6 }
 0xd7d   :  { %v2749_v1 = vpop.permute.xlu0 %2748 }
 0xd7e   :  { %4507 = vmatmul.mubr.msk.f32.vlgmr.msra.gmra.mxu1 %vm1527_vm1, %v2749_v1 }
 0xd7f   :  { %4521 = vmatpush3.msra.mxu1 %v5375_v31  ;;  %4528 = vmatprep.mubr.msk.f32.mxu1 %vm4877_vm0, %v4875_v28 }
 0xd80   :  { %4522 = vmatprep.subr.mxu1 %v4875_v28 }
 0xd81   :  { %4523 = vmatpush3.msra.mxu1 %v5383_v35 }
 0xd82   :  { %4524 = vmatprep.subr.mxu1 %v4875_v28 }
 0xd83   :  { %4525 = vmatpush3.msra.mxu1 %v5391_v36 }
 0xd84   :  { %4526 = vmatprep.subr.mxu1 %v4875_v28 }
 0xd85   :  { %4527 = vmatpush3.msra.mxu1 %v5400_v37 }
 0xd86   :  { %4542 = vmatprep.subr.mxu1 %v4875_v28 }
 0xdce   :  { %v2824_v52 = vpop.permute.xlu1 %2823 }
 0xdcf   :  { %4518 = vmatmul.mubr.msk.f32.vlgmr.msra.gmra.mxu0 %vm1527_vm1, %v2824_v52  ;;  %4529 = vmatmul.mubr.msk.f32.vlgmr.msra.gmra.mxu1 %vm1527_vm1, %v2824_v52 }
 0xdd0   :  { %4532 = vmatpush3.msra.mxu0 %v5429_v57  ;;  %4539 = vmatprep.mubr.msk.f32.mxu0 %vm4877_vm0, %v4875_v28 }
 0xdd1   :  { %4533 = vmatprep.subr.mxu0 %v4875_v28  ;;  %4543 = vmatpush3.msra.mxu1 %v5440_v59 }
 0xdd2   :  { %4534 = vmatpush3.msra.mxu0 %v5434_v58  ;;  %4544 = vmatprep.subr.mxu1 %v4875_v28 }
 0xdd3   :  { %4535 = vmatprep.subr.mxu0 %v4875_v28  ;;  %4545 = vmatpush3.msra.mxu1 %v5445_v60 }
 0xdd4   :  { %4536 = vmatpush3.msra.mxu0 %v5451_v61  ;;  %4546 = vmatprep.subr.mxu1 %v4875_v28 }
 0xdd5   :  { %4537 = vmatprep.subr.mxu0 %v4875_v28  ;;  %4547 = vmatpush3.msra.mxu1 %v5459_v62 }
 0xdd6   :  { %4538 = vmatpush3.msra.mxu0 %v5465_v63  ;;  %4548 = vmatprep.subr.mxu1 %v4875_v28 }
 0xdd7   :  { %4553 = vmatprep.subr.mxu0 %v4875_v28  ;;  %4549 = vmatpush3.msra.mxu1 %v5475_v0 }
 0xdd8   :  { %4550 = vmatprep.mubr.msk.f32.mxu1 %vm4877_vm0, %v4875_v28  ;;  %4564 = vmatprep.subr.mxu1 %v4875_v28 }
 0xe3e   :  { %v2818_v31 = vpop.f32.mrf.mxu1 }
 0xe3f   :  { %v2904_v35 = vadd.f32 %v2818_v31, %v5502_v8 }
 0xe40   :  { %v4508_v36 = vpop.f32.mrf.mxu1 }
 0xe41   :  { %2906 = vrot.lane.b32.xlu0 %v2904_v35, %s4876_s0 }
 0xe8f   :  { %v2893_v37 = vpop.f32.mrf.mxu0  ;;  %v2990_v2 = vpop.f32.mrf.mxu1 }
 0xe90   :  { %v2894_v47 = vadd.f32 %v5531_v13, %v2893_v37  ;;  %v3004_v3 = vadd.f32 %v2990_v2, %v5415_v32  ;;  %v2995_v14 = vrot.slane %v2990_v2, 6 }
 0xe91   :  { %v4519_v6 = vpop.f32.mrf.mxu0  ;;  %v4530_v53 = vpop.f32.mrf.mxu1 }
 0xe92   :  { %v2897_v5 = vadd.f32 %v2894_v47, %v2818_v31  ;;  %v3006_v7 = vrot.slane %v3004_v3, 6  ;;  %v2997_v15 = vadd.f32 %v2995_v14, %v5418_v45 }
 0xe94   :  { %v4035_v54 = vmul.f32 -1.442695, %v2897_v5  ;;  %3007 = vrot.lane.b32.xlu1 %v3006_v7, %s4876_s0  ;;  %v4037_v16 = vmul.f32 -1.442695, %v2997_v15 }
 0xe96   :  { %4816 = vpow2.f32 %v4035_v54 }
 0xea3   :  { %v4817_v4 = vpop.eup %4816 }
 0xea4   :  { %v2901_v9 = vadd.f32 1.0, %v4817_v4 }
 0xea6   :  { %4818 = vrcp.f32 %v2901_v9 }
 0xea7   :  { %4820 = vpow2.f32 %v4037_v16 }
 0xeb3   :  { %v4819_v10 = vpop.eup %4818  ;;  %v2907_v11 = vpop.permute.xlu0 %2906 }
 0xeb4   :  { %v2909_v12 = vmul.f32 %v4819_v10, %v2907_v11  ;;  %v4821_v17 = vpop.eup %4820  ;;  %v2916_v29 = vsub.f32 1.0, %v4819_v10  ;;  %v2922_v33 = vmul.f32 %v4819_v10, %v5706_v48  ;;  %v5774_v48 = vld [vmem:[%s5942_s3 + $0x18] sm:$0xff] }
 0xeb5   :  { %v3001_v18 = vadd.f32 1.0, %v4821_v17 }
 0xeb6   :  { %2911 = vrot.lane.b32.xlu0 %v2909_v12, %s4876_s0 }
 0xeb7   :  { %4822 = vrcp.f32 %v3001_v18 }
 0xec4   :  { %v4823_v19 = vpop.eup %4822 }
 0xec5   :  { %v3017_v40 = vsub.f32 1.0, %v4823_v19  ;;  %v3025_v42 = vmul.f32 %v4823_v19, %v3023_v39  ;;  %v4868_v39 = vld [vmem:[%s5945_s7 + $0x10] sm:$0xff] }
 0xf06   :  { %v3008_v20 = vpop.permute.xlu1 %3007 }
 0xf07   :  { %v3010_v21 = vmul.f32 %v4823_v19, %v3008_v20 }
 0xf09   :  { %3012 = vrot.lane.b32.xlu1 %v3010_v21, %s4876_s0 }
 0xf28   :  { %v2912_v22 = vpop.permute.xlu0 %2911 }
 0xf29   :  { %v2914_v23 = vadd.f32 %v2912_v22, %v2894_v47 }
 0xf2b   :  { %4824 = vtanh.f32 %v2914_v23 }
 0xf38   :  { %v4825_v24 = vpop.eup %4824 }
 0xf39   :  { %2918 = vrot.lane.b32.xlu0 %v4825_v24, %s4878_s25 }
 0xf7b   :  { %v3013_v25 = vpop.permute.xlu1 %3012 }
 0xf7c   :  { %v3015_v26 = vadd.f32 %v3013_v25, %v5418_v45 }
 0xf7e   :  { %4826 = vtanh.f32 %v3015_v26 }
 0xf8b   :  { %v4827_v27 = vpop.eup %4826 }
 0xf8c   :  { %3019 = vrot.lane.b32.xlu1 %v4827_v27, %s4878_s25 }
 0xfab   :  { %v2919_v30 = vpop.permute.xlu0 %2918 }
 0xfac   :  { %v2921_v34 = vmul.f32 %v2919_v30, %v2916_v29 }
 0xfae   :  { %v5761_v38 = vadd.f32 %v2922_v33, %v2921_v34  ;;  %v4866_v34 = vld [vmem:[%s5945_s7 + $0x18] sm:$0xff] }
 0xfb0   :  { %3028 = vrot.lane.b32.xlu0 %v5761_v38, %s4878_s25 }
 0xffe   :  { %v3020_v41 = vpop.permute.xlu1 %3019 }
 0xfff   :  { %v3022_v43 = vmul.f32 %v3020_v41, %v3017_v40  ;;  %v4869_v40 = vld [vmem:[%s5946_s5 + $0x10] sm:$0xff]  ;;  %v4870_v41 = vld [vmem:[%s5945_s7 + $0x8] sm:$0xff] }
0x1001   :  { %v5766_v44 = vadd.f32 %v3025_v42, %v3022_v43  ;;  %v4871_v42 = vld [vmem:[%s5946_s5 + $0x8] sm:$0xff]  ;;  %v4872_v43 = vld [vmem:[%s5945_s7] sm:$0xff] }
0x1003   :  { %v3103_v46 = vrot.slane %v5766_v44, 2  ;;  %v3304_v22 = vrot.slane %v5766_v44, 6  ;;  %v4873_v44 = vld [vmem:[%s5946_s5] sm:$0xff] }
0x1005   :  { %3104 = vrot.lane.b32.xlu1 %v3103_v46, %s4878_s25 }
0x1022   :  { %v3029_v49 = vpop.permute.xlu0 %3028 }
0x1023   :  { %4540 = vmatmul.mubr.msk.f32.vlgmr.msra.gmra.mxu0 %vm1527_vm1, %v3029_v49 }
0x1024   :  { %4554 = vmatpush3.msra.mxu0 %v5774_v48  ;;  %4561 = vmatprep.mubr.msk.f32.mxu0 %vm4877_vm0, %v4875_v28 }
0x1025   :  { %4555 = vmatprep.subr.mxu0 %v4875_v28 }
0x1026   :  { %4556 = vmatpush3.msra.mxu0 %v5783_v50 }
0x1027   :  { %4557 = vmatprep.subr.mxu0 %v4875_v28 }
0x1028   :  { %4558 = vmatpush3.msra.mxu0 %v5790_v51 }
0x1029   :  { %4559 = vmatprep.subr.mxu0 %v4875_v28 }
0x102a   :  { %4560 = vmatpush3.msra.mxu0 %v5797_v55 }
0x102b   :  { %4575 = vmatprep.subr.mxu0 %v4875_v28 }
0x1077   :  { %v3105_v56 = vpop.permute.xlu1 %3104 }
0x1078   :  { %4551 = vmatmul.mubr.msk.f32.vlgmr.msra.gmra.mxu1 %vm1527_vm1, %v3105_v56  ;;  %4562 = vmatmul.mubr.msk.f32.vlgmr.msra.gmra.mxu0 %vm1527_vm1, %v3105_v56 }
0x1079   :  { %4565 = vmatpush3.msra.mxu1 %v5429_v57  ;;  %4572 = vmatprep.mubr.msk.f32.mxu1 %vm4877_vm0, %v4875_v28 }
0x107a   :  { %4566 = vmatprep.subr.mxu1 %v4875_v28  ;;  %4576 = vmatpush3.msra.mxu0 %v5440_v59 }
0x107b   :  { %4567 = vmatpush3.msra.mxu1 %v5434_v58  ;;  %4577 = vmatprep.subr.mxu0 %v4875_v28 }
0x107c   :  { %4568 = vmatprep.subr.mxu1 %v4875_v28  ;;  %4578 = vmatpush3.msra.mxu0 %v5445_v60 }
0x107d   :  { %4569 = vmatpush3.msra.mxu1 %v5451_v61  ;;  %4579 = vmatprep.subr.mxu0 %v4875_v28 }
0x107e   :  { %4570 = vmatprep.subr.mxu1 %v4875_v28  ;;  %4580 = vmatpush3.msra.mxu0 %v5459_v62 }
0x107f   :  { %4571 = vmatpush3.msra.mxu1 %v5465_v63  ;;  %4581 = vmatprep.subr.mxu0 %v4875_v28 }
0x1080   :  { %4586 = vmatprep.subr.mxu1 %v4875_v28  ;;  %4582 = vmatpush3.msra.mxu0 %v5475_v0 }
0x1081   :  { %4583 = vmatprep.mubr.msk.f32.mxu0 %vm4877_vm0, %v4875_v28  ;;  %4597 = vmatprep.subr.mxu0 %v4875_v28 }
0x10e3   :  { %v3098_v57 = vpop.f32.mrf.mxu0 }
0x10e4   :  { %v3185_v58 = vadd.f32 %v3098_v57, %v5502_v8 }
0x10e5   :  { %v4541_v59 = vpop.f32.mrf.mxu0 }
0x10e6   :  { %3187 = vrot.lane.b32.xlu0 %v3185_v58, %s4876_s0 }
0x1138   :  { %v3174_v60 = vpop.f32.mrf.mxu1  ;;  %v3271_v61 = vpop.f32.mrf.mxu0 }
0x1139   :  { %v3175_v62 = vadd.f32 %v5531_v13, %v3174_v60  ;;  %v3285_v63 = vadd.f32 %v3271_v61, %v5415_v32  ;;  %v3276_v6 = vrot.slane %v3271_v61, 4 }
0x113a   :  { %v4552_v1 = vpop.f32.mrf.mxu1  ;;  %v4563_v52 = vpop.f32.mrf.mxu0 }
0x113b   :  { %v3178_v0 = vadd.f32 %v3175_v62, %v3098_v57  ;;  %v3287_v31 = vrot.slane %v3285_v63, 4  ;;  %v3278_v13 = vadd.f32 %v3276_v6, %v5418_v45 }
0x113d   :  { %v4040_v35 = vmul.f32 -1.442695, %v3178_v0  ;;  %3288 = vrot.lane.b32.xlu1 %v3287_v31, %s4876_s0  ;;  %v4042_v53 = vmul.f32 -1.442695, %v3278_v13 }
0x113f   :  { %4828 = vpow2.f32 %v4040_v35 }
0x114c   :  { %v4829_v36 = vpop.eup %4828 }
0x114d   :  { %v3182_v37 = vadd.f32 1.0, %v4829_v36 }
0x114f   :  { %4830 = vrcp.f32 %v3182_v37 }
0x1150   :  { %4832 = vpow2.f32 %v4042_v53 }
0x1158   :  { %v3188_v47 = vpop.permute.xlu0 %3187 }
0x115c   :  { %v4831_v2 = vpop.eup %4830 }
0x115d   :  { %v3190_v3 = vmul.f32 %v4831_v2, %v3188_v47  ;;  %v4833_v5 = vpop.eup %4832  ;;  %v3197_v17 = vsub.f32 1.0, %v4831_v2  ;;  %v3203_v19 = vmul.f32 %v4831_v2, %v5761_v38  ;;  %v4867_v38 = vld [vmem:[%s5946_s5 + $0x18] sm:$0xff] }
0x115e   :  { %v3282_v7 = vadd.f32 1.0, %v4833_v5 }
0x115f   :  { %3192 = vrot.lane.b32.xlu0 %v3190_v3, %s4876_s0 }
0x1160   :  { %4834 = vrcp.f32 %v3282_v7 }
0x116d   :  { %v4835_v54 = vpop.eup %4834 }
0x116e   :  { %v3298_v23 = vsub.f32 1.0, %v4835_v54  ;;  %v3306_v25 = vmul.f32 %v4835_v54, %v3304_v22 }
0x11af   :  { %v3289_v4 = vpop.permute.xlu1 %3288 }
0x11b0   :  { %v3291_v9 = vmul.f32 %v4835_v54, %v3289_v4 }
0x11b2   :  { %3293 = vrot.lane.b32.xlu1 %v3291_v9, %s4876_s0 }
0x11d1   :  { %v3193_v10 = vpop.permute.xlu0 %3192 }
0x11d2   :  { %v3195_v11 = vadd.f32 %v3193_v10, %v3175_v62 }
0x11d4   :  { %4836 = vtanh.f32 %v3195_v11 }
0x11e1   :  { %v4837_v12 = vpop.eup %4836 }
0x11e2   :  { %3199 = vrot.lane.b32.xlu0 %v4837_v12, %s4878_s25 }
0x1224   :  { %v3294_v14 = vpop.permute.xlu1 %3293 }
0x1225   :  { %v3296_v15 = vadd.f32 %v3294_v14, %v5418_v45 }
0x1227   :  { %4838 = vtanh.f32 %v3296_v15 }
0x1234   :  { %v4839_v16 = vpop.eup %4838 }
0x1235   :  { %3300 = vrot.lane.b32.xlu1 %v4839_v16, %s4878_s25 }
0x1254   :  { %v3200_v18 = vpop.permute.xlu0 %3199 }
0x1255   :  { %v3202_v20 = vmul.f32 %v3200_v18, %v3197_v17 }
0x1257   :  { %v5835_v21 = vadd.f32 %v3203_v19, %v3202_v20 }
0x1259   :  { %3309 = vrot.lane.b32.xlu0 %v5835_v21, %s4878_s25 }
0x12a7   :  { %v3301_v24 = vpop.permute.xlu1 %3300 }
0x12a8   :  { %v3303_v26 = vmul.f32 %v3301_v24, %v3298_v23 }
0x12aa   :  { %v5840_v27 = vadd.f32 %v3306_v25, %v3303_v26 }
0x12ac   :  { %v3384_v29 = vrot.slane %v5840_v27, 4  ;;  %v3585_v15 = vrot.slane %v5840_v27, 6 }
0x12ae   :  { %3385 = vrot.lane.b32.xlu1 %v3384_v29, %s4878_s25 }
0x12cb   :  { %v3310_v30 = vpop.permute.xlu0 %3309 }
0x12cc   :  { %4573 = vmatmul.mubr.msk.f32.vlgmr.msra.gmra.mxu1 %vm1527_vm1, %v3310_v30 }
0x12cd   :  { %4587 = vmatpush3.msra.mxu1 %v5774_v48  ;;  %4594 = vmatprep.mubr.msk.f32.mxu1 %vm4877_vm0, %v4875_v28 }
0x12ce   :  { %4588 = vmatprep.subr.mxu1 %v4875_v28 }
0x12cf   :  { %4589 = vmatpush3.msra.mxu1 %v5783_v50 }
0x12d0   :  { %4590 = vmatprep.subr.mxu1 %v4875_v28 }
0x12d1   :  { %4591 = vmatpush3.msra.mxu1 %v5790_v51 }
0x12d2   :  { %4592 = vmatprep.subr.mxu1 %v4875_v28 }
0x12d3   :  { %4593 = vmatpush3.msra.mxu1 %v5797_v55  ;;  %v4874_v55 = vld [vmem:[%s5948_s6] ss:$0 sm:$0xff] }
0x12d4   :  { %4608 = vmatprep.subr.mxu1 %v4875_v28 }
0x1320   :  { %v3386_v33 = vpop.permute.xlu1 %3385 }
0x1321   :  { %4584 = vmatmul.mubr.msk.f32.vlgmr.msra.gmra.mxu0 %vm1527_vm1, %v3386_v33  ;;  %4595 = vmatmul.mubr.msk.f32.vlgmr.msra.gmra.mxu1 %vm1527_vm1, %v3386_v33 }
0x1322   :  { %4598 = vmatpush3.msra.mxu0 %v4866_v34  ;;  %4605 = vmatprep.mubr.msk.f32.mxu0 %vm4877_vm0, %v4875_v28 }
0x1323   :  { %4599 = vmatprep.subr.mxu0 %v4875_v28  ;;  %4609 = vmatpush3.msra.mxu1 %v4867_v38 }
0x1324   :  { %4600 = vmatpush3.msra.mxu0 %v4868_v39  ;;  %4610 = vmatprep.subr.mxu1 %v4875_v28 }
0x1325   :  { %4601 = vmatprep.subr.mxu0 %v4875_v28  ;;  %4611 = vmatpush3.msra.mxu1 %v4869_v40 }
0x1326   :  { %4602 = vmatpush3.msra.mxu0 %v4870_v41  ;;  %4612 = vmatprep.subr.mxu1 %v4875_v28 }
0x1327   :  { %4603 = vmatprep.subr.mxu0 %v4875_v28  ;;  %4613 = vmatpush3.msra.mxu1 %v4871_v42 }
0x1328   :  { %4604 = vmatpush3.msra.mxu0 %v4872_v43  ;;  %4614 = vmatprep.subr.mxu1 %v4875_v28 }
0x1329   :  { %4615 = vmatpush3.msra.mxu1 %v4873_v44  ;;  %4616 = vmatprep.mubr.msk.f32.mxu1 %vm4877_vm0, %v4875_v28  ;;  %v3769_v44 = vld [vmem:[%s5949_s9 + $0x10] sm:$0xff] }
0x132a   :  { %4619 = vmatprep.subr.mxu0 %v4875_v28 }
0x138c   :  { %v3379_v46 = vpop.f32.mrf.mxu1 }
0x138d   :  { %v3466_v49 = vadd.f32 %v3379_v46, %v5502_v8 }
0x138e   :  { %v4574_v48 = vpop.f32.mrf.mxu1 }
0x138f   :  { %3468 = vrot.lane.b32.xlu0 %v3466_v49, %s4876_s0  ;;  %v3767_v49 = vld [vmem:[%s5949_s9] sm:$0xff] }
0x13e1   :  { %v3455_v50 = vpop.f32.mrf.mxu0  ;;  %v3552_v51 = vpop.f32.mrf.mxu1 }
0x13e2   :  { %v3456_v56 = vadd.f32 %v4874_v55, %v3455_v50  ;;  %v3566_v57 = vadd.f32 %v3552_v51, %v5415_v32  ;;  %v3557_v35 = vrot.slane %v3552_v51, 2  ;;  %v16_v50 = vstv %s5950_s10 }
0x13e3   :  { %v4585_v58 = vpop.f32.mrf.mxu0  ;;  %v4596_v59 = vpop.f32.mrf.mxu1  ;;  %17 = vst [vmem:[#allocation2] sm:$0x1] %v16_v50 }
0x13e4   :  { %v3459_v60 = vadd.f32 %v3456_v56, %v3379_v46  ;;  %v3568_v61 = vrot.slane %v3566_v57, 2  ;;  %v3559_v36 = vadd.f32 %v3557_v35, %v5418_v45  ;;  %v3768_v46 = vld [vmem:[%s5949_s9 + $0x8] sm:$0xff] }
0x13e6   :  { %v4045_v62 = vmul.f32 -1.442695, %v3459_v60  ;;  %3569 = vrot.lane.b32.xlu1 %v3568_v61, %s4876_s0  ;;  %v4047_v32 = vmul.f32 -1.442695, %v3559_v36 }
0x13e8   :  { %4840 = vpow2.f32 %v4045_v62 }
0x13f5   :  { %v4841_v63 = vpop.eup %4840 }
0x13f6   :  { %v3463_v1 = vadd.f32 1.0, %v4841_v63 }
0x13f8   :  { %4842 = vrcp.f32 %v3463_v1 }
0x13f9   :  { %4844 = vpow2.f32 %v4047_v32 }
0x1401   :  { %v3469_v0 = vpop.permute.xlu0 %3468 }
0x1405   :  { %v4843_v52 = vpop.eup %4842 }
0x1406   :  { %v3471_v31 = vmul.f32 %v4843_v52, %v3469_v0  ;;  %v4845_v37 = vpop.eup %4844  ;;  %v3478_v9 = vsub.f32 1.0, %v4843_v52  ;;  %v3484_v11 = vmul.f32 %v4843_v52, %v5835_v21 }
0x1407   :  { %v3563_v2 = vadd.f32 1.0, %v4845_v37 }
0x1408   :  { %3473 = vrot.lane.b32.xlu0 %v3471_v31, %s4876_s0 }
0x1409   :  { %4846 = vrcp.f32 %v3563_v2 }
0x1416   :  { %v4847_v47 = vpop.eup %4846 }
0x1417   :  { %v3579_v16 = vsub.f32 1.0, %v4847_v47  ;;  %v3587_v18 = vmul.f32 %v4847_v47, %v3585_v15 }
0x1458   :  { %v3570_v3 = vpop.permute.xlu1 %3569 }
0x1459   :  { %v3572_v6 = vmul.f32 %v4847_v47, %v3570_v3 }
0x145b   :  { %3574 = vrot.lane.b32.xlu1 %v3572_v6, %s4876_s0 }
0x147a   :  { %v3474_v13 = vpop.permute.xlu0 %3473 }
0x147b   :  { %v3476_v53 = vadd.f32 %v3474_v13, %v3456_v56 }
0x147d   :  { %4848 = vtanh.f32 %v3476_v53 }
0x148a   :  { %v4849_v5 = vpop.eup %4848 }
0x148b   :  { %3480 = vrot.lane.b32.xlu0 %v4849_v5, %s4878_s25 }
0x14cd   :  { %v3575_v7 = vpop.permute.xlu1 %3574 }
0x14ce   :  { %v3577_v54 = vadd.f32 %v3575_v7, %v5418_v45 }
0x14d0   :  { %4850 = vtanh.f32 %v3577_v54 }
0x14dd   :  { %v4851_v4 = vpop.eup %4850 }
0x14de   :  { %3581 = vrot.lane.b32.xlu1 %v4851_v4, %s4878_s25 }
0x14fd   :  { %v3481_v10 = vpop.permute.xlu0 %3480 }
0x14fe   :  { %v3483_v12 = vmul.f32 %v3481_v10, %v3478_v9 }
0x1500   :  { %v3485_v14 = vadd.f32 %v3484_v11, %v3483_v12 }
0x1502   :  { %3590 = vrot.lane.b32.xlu0 %v3485_v14, %s4878_s25 }
0x1550   :  { %v3582_v17 = vpop.permute.xlu1 %3581 }
0x1551   :  { %v3584_v19 = vmul.f32 %v3582_v17, %v3579_v16 }
0x1553   :  { %v3588_v20 = vadd.f32 %v3587_v18, %v3584_v19 }
0x1555   :  { %v3665_v45 = vrot.slane %v3588_v20, 6 }
0x1557   :  { %3666 = vrot.lane.b32.xlu1 %v3665_v45, %s4878_s25 }
0x1574   :  { %v3591_v22 = vpop.permute.xlu0 %3590 }
0x1575   :  { %4606 = vmatmul.mubr.msk.f32.vlgmr.msra.gmra.mxu0 %vm1527_vm1, %v3591_v22 }
0x1576   :  { %4627 = vmatprep.mubr.msk.f32.mxu0 %vm4877_vm0, %v4875_v28 }
0x15c9   :  { %v3667_v21 = vpop.permute.xlu1 %3666 }
0x15ca   :  { %4617 = vmatmul.mubr.msk.f32.vlgmr.msra.gmra.mxu1 %vm1527_vm1, %v3667_v21 }
0x1635   :  { %v3660_v23 = vpop.f32.mrf.mxu0 }
0x1636   :  { %v3747_v24 = vadd.f32 %v3660_v23, %v5502_v8  ;;  %v3770_v8 = vld [vmem:[%s5949_s9 + $0x18] sm:$0xff] }
0x1637   :  { %v4607_v25 = vpop.f32.mrf.mxu0  ;;  %4620 = vmatpush3.msra.mxu0 %v3770_v8 }
0x1638   :  { %3749 = vrot.lane.b32.xlu0 %v3747_v24, %s4876_s0  ;;  %4621 = vmatprep.subr.mxu0 %v4875_v28 }
0x1639   :  { %4622 = vmatpush3.msra.mxu0 %v3769_v44 }
0x163a   :  { %4623 = vmatprep.subr.mxu0 %v4875_v28 }
0x163b   :  { %4624 = vmatpush3.msra.mxu0 %v3768_v46 }
0x163c   :  { %4625 = vmatprep.subr.mxu0 %v4875_v28  ;;  %v4051_v28 = vld [vmem:[#allocation2] ss:$0 sm:$0xff] }
0x163d   :  { %4626 = vmatpush3.msra.mxu0 %v3767_v49 }
0x168a   :  { %v3736_v26 = vpop.f32.mrf.mxu1 }
0x168b   :  { %v3737_v27 = vadd.f32 %v4874_v55, %v3736_v26 }
0x168c   :  { %v4618_v29 = vpop.f32.mrf.mxu1 }
0x168d   :  { %v3740_v30 = vadd.f32 %v3737_v27, %v3660_v23 }
0x168f   :  { %v4050_v33 = vmul.f32 -1.442695, %v3740_v30 }
0x1691   :  { %4852 = vpow2.f32 %v4050_v33 }
0x169e   :  { %v4853_v34 = vpop.eup %4852 }
0x169f   :  { %v3744_v38 = vadd.f32 1.0, %v4853_v34 }
0x16a1   :  { %4854 = vrcp.f32 %v3744_v38 }
0x16aa   :  { %v3750_v40 = vpop.permute.xlu0 %3749 }
0x16ae   :  { %v4855_v39 = vpop.eup %4854 }
0x16af   :  { %v3752_v41 = vmul.f32 %v4855_v39, %v3750_v40  ;;  %v3759_v51 = vsub.f32 1.0, %v4855_v39  ;;  %v3765_v56 = vmul.f32 %v4855_v39, %v3485_v14 }
0x16b1   :  { %3754 = vrot.lane.b32.xlu1 %v3752_v41, %s4876_s0 }
0x1723   :  { %v3755_v42 = vpop.permute.xlu1 %3754 }
0x1724   :  { %v3757_v43 = vadd.f32 %v3755_v42, %v3737_v27 }
0x1726   :  { %4856 = vtanh.f32 %v3757_v43 }
0x1733   :  { %v4857_v48 = vpop.eup %4856 }
0x1734   :  { %3761 = vrot.lane.b32.xlu0 %v4857_v48, %s4878_s25 }
0x17a6   :  { %v3762_v55 = vpop.permute.xlu0 %3761 }
0x17a7   :  { %v3764_v57 = vmul.f32 %v3762_v55, %v3759_v51 }
0x17a9   :  { %v3766_v58 = vadd.f32 %v3765_v56, %v3764_v57 }
0x17ab   :  { %3779 = vrot.lane.b32.xlu1 %v3766_v58, %s4878_s25 }
0x181d   :  { %v3780_v59 = vpop.permute.xlu1 %3779 }
0x181e   :  { %4628 = vmatmul.mubr.msk.f32.vlgmr.msra.gmra.mxu0 %vm1527_vm1, %v3780_v59 }
0x18de   :  { %v3849_v60 = vpop.f32.mrf.mxu0 }
0x18df   :  { %v3850_v61 = vadd.f32 %v4051_v28, %v3849_v60 }
0x18e0   :  { %v4629_v62 = vpop.f32.mrf.mxu0 }
0x18e1   :  { %v4053_v63 = vmul.f32 -1.442695, %v3850_v61 }
0x18e3   :  { %4858 = vpow2.f32 %v4053_v63 }
0x18f0   :  { %v4859_v1 = vpop.eup %4858 }
0x18f1   :  { %v3856_v52 = vadd.f32 1.0, %v4859_v1 }
0x18f3   :  { %4860 = vrcp.f32 %v3856_v52 }
0x1900   :  { %v4861_v0 = vpop.eup %4860 }
0x1901   :  { %3860 = vst.msk [vmem:[%s5951_s11] sm:$0x3] %vm3859_vm2, %v4861_v0 }

</bundles_post_ra>
